<compile_context>
chip_gen: v7x
topology: tpu7x:2x2x1
jax: 0.10.0
libtpu: 0.0.40
codegen_flags: <defaults>
</compile_context>

<pallas_src>
import functools

import jax
import jax.numpy as jnp
from jax.experimental import pallas as pl
from jax.experimental.pallas import tpu as pltpu


LANE = 128     # pad every feature dim to this -> lane-dense VMEM tiles
ROW_PAD = 8    # pad graph-batch rows to a sublane multiple


def _round_up(x, m):
    return (x + m - 1) // m * m


def _pad_to(a, shape):
    pads = [(0, t - s) for s, t in zip(a.shape, shape)]
    return jnp.pad(a, pads)


def _pad_cols(a, width):
    return jnp.pad(a, ((0, 0), (0, width - a.shape[1])))


# ----------------------------- fused Pallas kernel --------------------------

def _fused_gnn_kernel(n_conv, n_dense,
                      x_ref, adj_ref, eagg_ref, pool_ref,
                      wconv_ref, bconv_ref, gconv_ref, beconv_ref,
                      wdense_ref, bdense_ref, wout_ref, bout_ref,
                      y_ref, embed_ref):
    """Entire GNN_Base forward; everything resident in VMEM for one call."""
    adj = adj_ref[...].astype(jnp.float32)       # [N, N] 0/1 edge counts
    eagg = eagg_ref[...]                         # [N, LANE] scatter-added edges
    h = x_ref[...]                               # [N, LANE]
    inv_n = 1.0 / h.shape[0]

    # Message-passing stack: conv -> ReLU -> BatchNorm1d (dropout_p=0 -> no-op).
    for l in range(n_conv):
        nbr = jnp.dot(adj, h, preferred_element_type=jnp.float32)
        cat = jnp.concatenate([h, nbr, eagg], axis=1)            # [N, 3*LANE]
        z = jnp.dot(cat, wconv_ref[l], preferred_element_type=jnp.float32)
        z = jnp.maximum(z + bconv_ref[l], 0.0)                   # ReLU
        # BatchNorm1d (training-mode batch stats, biased var), single-pass.
        s1 = jnp.sum(z, axis=0, keepdims=True) * inv_n
        s2 = jnp.sum(z * z, axis=0, keepdims=True) * inv_n
        var = s2 - s1 * s1
        h = (z - s1) * jax.lax.rsqrt(var + 1e-5) * gconv_ref[l] + beconv_ref[l]

    # pooling_layer == 'sum': global_add_pool(x, batch) as a dense matmul.
    pooled = jnp.dot(pool_ref[...].astype(jnp.float32), h,
                     preferred_element_type=jnp.float32)         # [Bp, LANE]
    embed_ref[...] = pooled

    # Dense head: ReLU(Linear) stack, then final Linear.
    y = pooled
    for l in range(n_dense):
        y = jnp.maximum(
            jnp.dot(y, wdense_ref[l], preferred_element_type=jnp.float32)
            + bdense_ref[l], 0.0)
    y_ref[...] = (jnp.dot(y, wout_ref[...], preferred_element_type=jnp.float32)
                  + bout_ref[...])


# --------------------------- parameters / packing ---------------------------

def init_params(key, in_channels, out_channels, edge_dim,
                convs_layers, dense_layers):
    """Raw, PyTorch-shaped synthetic parameters."""
    params = {"convs": [], "lins": [], "out": None}
    conv_dims = [in_channels] + list(convs_layers)
    keys = iter(jax.random.split(key, 64))

    def w(shape, scale=0.1):
        return (scale * jax.random.normal(next(keys), shape)).astype(jnp.float32)

    for i in range(len(conv_dims) - 1):
        cin, cout = conv_dims[i], conv_dims[i + 1]
        params["convs"].append(dict(
            w_root=w((cin, cout)),
            w_nbr=w((cin, cout)),
            w_edge=w((edge_dim, cout)),
            b=w((1, cout)),
            gamma=jnp.ones((1, cout), jnp.float32),   # BatchNorm1d affine init
            beta=jnp.zeros((1, cout), jnp.float32),
        ))

    dense_dims = [conv_dims[-1]] + list(dense_layers)
    for i in range(len(dense_dims) - 1):
        params["lins"].append(dict(
            w=w((dense_dims[i], dense_dims[i + 1])),
            b=w((1, dense_dims[i + 1])),
        ))
    params["out"] = dict(w=w((dense_dims[-1], out_channels)),
                         b=w((1, out_channels)))
    return params


def pack_params(params):
    """Pad to LANE lanes and concatenate [W_root; W_nbr; W_edge] ONCE, host-side."""
    wconv, bconv, gconv, beconv = [], [], [], []
    for layer in params["convs"]:
        wr = _pad_to(layer["w_root"], (LANE, LANE))
        wn = _pad_to(layer["w_nbr"], (LANE, LANE))
        we = _pad_to(layer["w_edge"], (LANE, LANE))
        wconv.append(jnp.concatenate([wr, wn, we], axis=0))    # [3*LANE, LANE]
        bconv.append(_pad_to(layer["b"], (1, LANE)))
        gconv.append(_pad_to(layer["gamma"], (1, LANE)))       # padded gamma=0
        beconv.append(_pad_to(layer["beta"], (1, LANE)))       # padded beta=0

    wdense, bdense = [], []
    for layer in params["lins"]:
        wdense.append(_pad_to(layer["w"], (LANE, LANE)))
        bdense.append(_pad_to(layer["b"], (1, LANE)))

    return dict(
        wconv=jnp.stack(wconv),          # [Lc, 3*LANE, LANE]
        bconv=jnp.stack(bconv),          # [Lc, 1, LANE]
        gconv=jnp.stack(gconv),
        beconv=jnp.stack(beconv),
        wdense=jnp.stack(wdense),        # [Ld, LANE, LANE]
        bdense=jnp.stack(bdense),        # [Ld, 1, LANE]
        wout=_pad_to(params["out"]["w"], (LANE, LANE)),
        bout=_pad_to(params["out"]["b"], (1, LANE)),
    )


# --------------------------------- forward ----------------------------------

def gnn_base_forward(packed, x, edge_index, edge_attr, batch, *,
                     num_graphs, out_channels, embed_channels):
    """Pallas implementation of GNN_Base.forward (pooling_layer='sum')."""
    n = x.shape[0]
    src, dst = edge_index[0], edge_index[1]
    b_pad = _round_up(max(num_graphs, 1), ROW_PAD)

    # Dense graph operators (XLA glue feeding the fused kernel).
    adj = (jnp.zeros((n, n), jnp.float32)
           .at[dst, src].add(1.0)).astype(jnp.bfloat16)             # [N, N]
    pool = jax.nn.one_hot(batch, b_pad, dtype=jnp.bfloat16).T       # [Bp, N]
    # Edge-feature scatter-add to target nodes (replaces [N,E] one-hot matmul).
    eagg = jax.ops.segment_sum(edge_attr.astype(jnp.float32), dst,
                               num_segments=n)                      # [N, De]
    eagg = _pad_cols(eagg, LANE)
    x_p = _pad_cols(x.astype(jnp.float32), LANE)

    n_conv = packed["wconv"].shape[0]
    n_dense = packed["wdense"].shape[0]
    kernel = functools.partial(_fused_gnn_kernel, n_conv, n_dense)

    y_pad, embed_pad = pl.pallas_call(
        kernel,
        out_shape=(jax.ShapeDtypeStruct((b_pad, LANE), jnp.float32),
                   jax.ShapeDtypeStruct((b_pad, LANE), jnp.float32)),
        compiler_params=pltpu.CompilerParams(
            vmem_limit_bytes=32 * 1024 * 1024),
    )(x_p, adj, eagg, pool,
      packed["wconv"], packed["bconv"], packed["gconv"], packed["beconv"],
      packed["wdense"], packed["bdense"], packed["wout"], packed["bout"])

    y = y_pad[:num_graphs, :out_channels]
    embed = embed_pad[:num_graphs, :embed_channels]
    contributes = None
    mask = None
    pool_loss = jnp.float32(0.0)
    return y, embed, contributes, mask, pool_loss


# --------------------------- pure-JAX reference ------------------------------

def gnn_base_reference(params, x, edge_index, edge_attr, batch, num_graphs):
    n = x.shape[0]
    src, dst = edge_index[0], edge_index[1]
    adj = jnp.zeros((n, n), jnp.float32).at[dst, src].add(1.0)
    eagg = jax.ops.segment_sum(edge_attr, dst, num_segments=n)
    h = x
    for layer in params["convs"]:
        nbr = adj @ h
        z = (h @ layer["w_root"] + nbr @ layer["w_nbr"]
             + eagg @ layer["w_edge"] + layer["b"])
        z = jnp.maximum(z, 0.0)
        mean = jnp.mean(z, axis=0, keepdims=True)
        var = jnp.mean((z - mean) ** 2, axis=0, keepdims=True)
        h = (z - mean) * jax.lax.rsqrt(var + 1e-5) * layer["gamma"] + layer["beta"]
    pool = jax.nn.one_hot(batch, num_graphs, dtype=jnp.float32).T
    y = pool @ h
    embed = y
    for layer in params["lins"]:
        y = jnp.maximum(y @ layer["w"] + layer["b"], 0.0)
    y = y @ params["out"]["w"] + params["out"]["b"]
    return y, embed


# ----------------------------------- main ------------------------------------

if __name__ == "__main__":
    key = jax.random.PRNGKey(0)
    k_param, k_x, k_e, k_src, k_dst = jax.random.split(key, 5)

    # Small, module-consistent config.
    in_channels = 16
    out_channels = 2
    edge_dim = 8
    convs_layers = [32, 16, 8]
    dense_layers = [32, 16, 8]

    num_graphs = 4
    nodes_per_graph = 16
    N = num_graphs * nodes_per_graph          # 64 nodes total
    E = 128                                   # 128 directed edges

    x = jax.random.normal(k_x, (N, in_channels), dtype=jnp.float32)
    edge_attr = jax.random.normal(k_e, (E, edge_dim), dtype=jnp.float32)
    # Random edges, kept intra-graph so the batch structure is well-formed.
    graph_of_edge = jax.random.randint(k_src, (E,), 0, num_graphs)
    src_local = jax.random.randint(k_dst, (E,), 0, nodes_per_graph)
    dst_local = jax.random.randint(jax.random.fold_in(k_dst, 1),
                                   (E,), 0, nodes_per_graph)
    src = graph_of_edge * nodes_per_graph + src_local
    dst = graph_of_edge * nodes_per_graph + dst_local
    edge_index = jnp.stack([src, dst]).astype(jnp.int32)
    batch = jnp.repeat(jnp.arange(num_graphs, dtype=jnp.int32),
                       nodes_per_graph)

    params = init_params(k_param, in_channels, out_channels, edge_dim,
                         convs_layers, dense_layers)
    packed = pack_params(params)              # pad/concat weights once, host-side

    fwd = jax.jit(functools.partial(gnn_base_forward,
                                    num_graphs=num_graphs,
                                    out_channels=out_channels,
                                    embed_channels=convs_layers[-1]))
    y, embed, contributes, mask, pool_loss = fwd(
        packed, x, edge_index, edge_attr, batch)
    jax.block_until_ready((y, embed, pool_loss))

    assert y.shape == (num_graphs, out_channels)
    assert embed.shape == (num_graphs, convs_layers[-1])
    assert bool(jnp.all(jnp.isfinite(y)))
    assert bool(jnp.all(jnp.isfinite(embed)))

    # Loose numerical check against a pure-JAX reference of the same math.
    with jax.default_matmul_precision("highest"):
        y_ref, embed_ref = gnn_base_reference(
            params, x, edge_index, edge_attr, batch, num_graphs)
    assert bool(jnp.allclose(y, y_ref, rtol=2e-2, atol=2e-2))
    assert bool(jnp.allclose(embed, embed_ref, rtol=2e-2, atol=2e-2))

    print("KERNEL_OK")
</pallas_src>

<mosaic_0001>
module attributes {stable_mosaic.version = 11 : i64} {
  func.func private @main(%arg0: i32) attributes {dimension_semantics = [#tpu.dimension_semantics<core_parallel>], iteration_bounds = array<i64: 2>, tpu.core_type = #tpu.core_type<sc_scalar_subcore>, window_params = []} {
    return
  }
}

module attributes {stable_mosaic.version = 11 : i64} {
  func.func private @main(%arg0: i32) attributes {dimension_semantics = [#tpu.dimension_semantics<core_parallel>], iteration_bounds = array<i64: 2>, tpu.core_type = #tpu.core_type<sc_scalar_subcore>, window_params = []} {
    return
  }
}

module attributes {stable_mosaic.version = 11 : i64} {
  func.func @_fused_gnn_kernel(%arg0: memref<64x128xf32, #tpu.memory_space<vmem>>, %arg1: memref<64x64xbf16, #tpu.memory_space<vmem>>, %arg2: memref<64x128xf32, #tpu.memory_space<vmem>>, %arg3: memref<8x64xbf16, #tpu.memory_space<vmem>>, %arg4: memref<3x384x128xf32, #tpu.memory_space<vmem>>, %arg5: memref<3x1x128xf32, #tpu.memory_space<vmem>>, %arg6: memref<3x1x128xf32, #tpu.memory_space<vmem>>, %arg7: memref<3x1x128xf32, #tpu.memory_space<vmem>>, %arg8: memref<3x128x128xf32, #tpu.memory_space<vmem>>, %arg9: memref<3x1x128xf32, #tpu.memory_space<vmem>>, %arg10: memref<128x128xf32, #tpu.memory_space<vmem>>, %arg11: memref<1x128xf32, #tpu.memory_space<vmem>>, %arg12: memref<8x128xf32, #tpu.memory_space<vmem>>, %arg13: memref<8x128xf32, #tpu.memory_space<vmem>>) attributes {dimension_semantics = [], scalar_prefetch = 0 : i64, scratch_operands = 0 : i64, tpu.core_type = #tpu.core_type<tc>} {
    %c0 = arith.constant 0 : index
    %c0_0 = arith.constant 0 : index
    %0 = vector.load %arg1[%c0, %c0_0] : memref<64x64xbf16, #tpu.memory_space<vmem>>, vector<64x64xbf16>
    %1 = arith.extf %0 : vector<64x64xbf16> to vector<64x64xf32>
    %c0_1 = arith.constant 0 : index
    %c0_2 = arith.constant 0 : index
    %2 = vector.load %arg2[%c0_1, %c0_2] : memref<64x128xf32, #tpu.memory_space<vmem>>, vector<64x128xf32>
    %c0_3 = arith.constant 0 : index
    %c0_4 = arith.constant 0 : index
    %3 = vector.load %arg0[%c0_3, %c0_4] : memref<64x128xf32, #tpu.memory_space<vmem>>, vector<64x128xf32>
    %cst = arith.constant dense<0.000000e+00> : vector<64x128xf32>
    %4 = tpu.matmul %1, %3, %cst {dimension_numbers = #tpu.dot_dimension_numbers<[1], [0], [0], [1], [0, 0, 1, 1], [], []>} : vector<64x64xf32>, vector<64x128xf32>, vector<64x128xf32> -> vector<64x128xf32>
    %5 = tpu.concatenate %3, %4, %2 in 1 : vector<64x128xf32>, vector<64x128xf32>, vector<64x128xf32> -> vector<64x384xf32>
    %c0_5 = arith.constant 0 : index
    %c0_6 = arith.constant 0 : index
    %c0_7 = arith.constant 0 : index
    %6 = vector.load %arg4[%c0_5, %c0_6, %c0_7] : memref<3x384x128xf32, #tpu.memory_space<vmem>>, vector<1x384x128xf32>
    %7 = vector.shape_cast %6 : vector<1x384x128xf32> to vector<384x128xf32>
    %cst_8 = arith.constant dense<0.000000e+00> : vector<64x128xf32>
    %8 = tpu.matmul %5, %7, %cst_8 {dimension_numbers = #tpu.dot_dimension_numbers<[1], [0], [0], [1], [0, 0, 1, 1], [], []>} : vector<64x384xf32>, vector<384x128xf32>, vector<64x128xf32> -> vector<64x128xf32>
    %c0_9 = arith.constant 0 : index
    %c0_10 = arith.constant 0 : index
    %c0_11 = arith.constant 0 : index
    %9 = vector.load %arg5[%c0_9, %c0_10, %c0_11] : memref<3x1x128xf32, #tpu.memory_space<vmem>>, vector<1x1x128xf32>
    %10 = vector.shape_cast %9 : vector<1x1x128xf32> to vector<1x128xf32>
    %11 = vector.broadcast %10 : vector<1x128xf32> to vector<64x128xf32>
    %12 = arith.addf %8, %11 : vector<64x128xf32>
    %cst_12 = arith.constant 0.000000e+00 : f32
    %13 = vector.broadcast %cst_12 : f32 to vector<64x128xf32>
    %14 = arith.maximumf %12, %13 : vector<64x128xf32>
    %cst_13 = arith.constant dense<0.000000e+00> : vector<128xf32>
    %15 = vector.multi_reduction <add>, %14, %cst_13 [0] : vector<64x128xf32> to vector<128xf32>
    %16 = vector.shape_cast %15 : vector<128xf32> to vector<1x128xf32>
    %cst_14 = arith.constant 1.562500e-02 : f32
    %17 = vector.broadcast %cst_14 : f32 to vector<1x128xf32>
    %18 = arith.mulf %16, %17 : vector<1x128xf32>
    %19 = arith.mulf %14, %14 : vector<64x128xf32>
    %cst_15 = arith.constant dense<0.000000e+00> : vector<128xf32>
    %20 = vector.multi_reduction <add>, %19, %cst_15 [0] : vector<64x128xf32> to vector<128xf32>
    %21 = vector.shape_cast %20 : vector<128xf32> to vector<1x128xf32>
    %cst_16 = arith.constant 1.562500e-02 : f32
    %22 = vector.broadcast %cst_16 : f32 to vector<1x128xf32>
    %23 = arith.mulf %21, %22 : vector<1x128xf32>
    %24 = arith.mulf %18, %18 : vector<1x128xf32>
    %25 = arith.subf %23, %24 : vector<1x128xf32>
    %26 = vector.broadcast %18 : vector<1x128xf32> to vector<64x128xf32>
    %27 = arith.subf %14, %26 : vector<64x128xf32>
    %cst_17 = arith.constant 9.99999974E-6 : f32
    %28 = vector.broadcast %cst_17 : f32 to vector<1x128xf32>
    %29 = arith.addf %25, %28 : vector<1x128xf32>
    %30 = math.rsqrt %29 : vector<1x128xf32>
    %31 = vector.broadcast %30 : vector<1x128xf32> to vector<64x128xf32>
    %32 = arith.mulf %27, %31 : vector<64x128xf32>
    %c0_18 = arith.constant 0 : index
    %c0_19 = arith.constant 0 : index
    %c0_20 = arith.constant 0 : index
    %33 = vector.load %arg6[%c0_18, %c0_19, %c0_20] : memref<3x1x128xf32, #tpu.memory_space<vmem>>, vector<1x1x128xf32>
    %34 = vector.shape_cast %33 : vector<1x1x128xf32> to vector<1x128xf32>
    %35 = vector.broadcast %34 : vector<1x128xf32> to vector<64x128xf32>
    %36 = arith.mulf %32, %35 : vector<64x128xf32>
    %c0_21 = arith.constant 0 : index
    %c0_22 = arith.constant 0 : index
    %c0_23 = arith.constant 0 : index
    %37 = vector.load %arg7[%c0_21, %c0_22, %c0_23] : memref<3x1x128xf32, #tpu.memory_space<vmem>>, vector<1x1x128xf32>
    %38 = vector.shape_cast %37 : vector<1x1x128xf32> to vector<1x128xf32>
    %39 = vector.broadcast %38 : vector<1x128xf32> to vector<64x128xf32>
    %40 = arith.addf %36, %39 : vector<64x128xf32>
    %cst_24 = arith.constant dense<0.000000e+00> : vector<64x128xf32>
    %41 = tpu.matmul %1, %40, %cst_24 {dimension_numbers = #tpu.dot_dimension_numbers<[1], [0], [0], [1], [0, 0, 1, 1], [], []>} : vector<64x64xf32>, vector<64x128xf32>, vector<64x128xf32> -> vector<64x128xf32>
    %42 = tpu.concatenate %40, %41, %2 in 1 : vector<64x128xf32>, vector<64x128xf32>, vector<64x128xf32> -> vector<64x384xf32>
    %c1 = arith.constant 1 : index
    %c0_25 = arith.constant 0 : index
    %c0_26 = arith.constant 0 : index
    %43 = vector.load %arg4[%c1, %c0_25, %c0_26] : memref<3x384x128xf32, #tpu.memory_space<vmem>>, vector<1x384x128xf32>
    %44 = vector.shape_cast %43 : vector<1x384x128xf32> to vector<384x128xf32>
    %cst_27 = arith.constant dense<0.000000e+00> : vector<64x128xf32>
    %45 = tpu.matmul %42, %44, %cst_27 {dimension_numbers = #tpu.dot_dimension_numbers<[1], [0], [0], [1], [0, 0, 1, 1], [], []>} : vector<64x384xf32>, vector<384x128xf32>, vector<64x128xf32> -> vector<64x128xf32>
    %c1_28 = arith.constant 1 : index
    %c0_29 = arith.constant 0 : index
    %c0_30 = arith.constant 0 : index
    %46 = vector.load %arg5[%c1_28, %c0_29, %c0_30] : memref<3x1x128xf32, #tpu.memory_space<vmem>>, vector<1x1x128xf32>
    %47 = vector.shape_cast %46 : vector<1x1x128xf32> to vector<1x128xf32>
    %48 = vector.broadcast %47 : vector<1x128xf32> to vector<64x128xf32>
    %49 = arith.addf %45, %48 : vector<64x128xf32>
    %cst_31 = arith.constant 0.000000e+00 : f32
    %50 = vector.broadcast %cst_31 : f32 to vector<64x128xf32>
    %51 = arith.maximumf %49, %50 : vector<64x128xf32>
    %cst_32 = arith.constant dense<0.000000e+00> : vector<128xf32>
    %52 = vector.multi_reduction <add>, %51, %cst_32 [0] : vector<64x128xf32> to vector<128xf32>
    %53 = vector.shape_cast %52 : vector<128xf32> to vector<1x128xf32>
    %cst_33 = arith.constant 1.562500e-02 : f32
    %54 = vector.broadcast %cst_33 : f32 to vector<1x128xf32>
    %55 = arith.mulf %53, %54 : vector<1x128xf32>
    %56 = arith.mulf %51, %51 : vector<64x128xf32>
    %cst_34 = arith.constant dense<0.000000e+00> : vector<128xf32>
    %57 = vector.multi_reduction <add>, %56, %cst_34 [0] : vector<64x128xf32> to vector<128xf32>
    %58 = vector.shape_cast %57 : vector<128xf32> to vector<1x128xf32>
    %cst_35 = arith.constant 1.562500e-02 : f32
    %59 = vector.broadcast %cst_35 : f32 to vector<1x128xf32>
    %60 = arith.mulf %58, %59 : vector<1x128xf32>
    %61 = arith.mulf %55, %55 : vector<1x128xf32>
    %62 = arith.subf %60, %61 : vector<1x128xf32>
    %63 = vector.broadcast %55 : vector<1x128xf32> to vector<64x128xf32>
    %64 = arith.subf %51, %63 : vector<64x128xf32>
    %cst_36 = arith.constant 9.99999974E-6 : f32
    %65 = vector.broadcast %cst_36 : f32 to vector<1x128xf32>
    %66 = arith.addf %62, %65 : vector<1x128xf32>
    %67 = math.rsqrt %66 : vector<1x128xf32>
    %68 = vector.broadcast %67 : vector<1x128xf32> to vector<64x128xf32>
    %69 = arith.mulf %64, %68 : vector<64x128xf32>
    %c1_37 = arith.constant 1 : index
    %c0_38 = arith.constant 0 : index
    %c0_39 = arith.constant 0 : index
    %70 = vector.load %arg6[%c1_37, %c0_38, %c0_39] : memref<3x1x128xf32, #tpu.memory_space<vmem>>, vector<1x1x128xf32>
    %71 = vector.shape_cast %70 : vector<1x1x128xf32> to vector<1x128xf32>
    %72 = vector.broadcast %71 : vector<1x128xf32> to vector<64x128xf32>
    %73 = arith.mulf %69, %72 : vector<64x128xf32>
    %c1_40 = arith.constant 1 : index
    %c0_41 = arith.constant 0 : index
    %c0_42 = arith.constant 0 : index
    %74 = vector.load %arg7[%c1_40, %c0_41, %c0_42] : memref<3x1x128xf32, #tpu.memory_space<vmem>>, vector<1x1x128xf32>
    %75 = vector.shape_cast %74 : vector<1x1x128xf32> to vector<1x128xf32>
    %76 = vector.broadcast %75 : vector<1x128xf32> to vector<64x128xf32>
    %77 = arith.addf %73, %76 : vector<64x128xf32>
    %cst_43 = arith.constant dense<0.000000e+00> : vector<64x128xf32>
    %78 = tpu.matmul %1, %77, %cst_43 {dimension_numbers = #tpu.dot_dimension_numbers<[1], [0], [0], [1], [0, 0, 1, 1], [], []>} : vector<64x64xf32>, vector<64x128xf32>, vector<64x128xf32> -> vector<64x128xf32>
    %79 = tpu.concatenate %77, %78, %2 in 1 : vector<64x128xf32>, vector<64x128xf32>, vector<64x128xf32> -> vector<64x384xf32>
    %c2 = arith.constant 2 : index
    %c0_44 = arith.constant 0 : index
    %c0_45 = arith.constant 0 : index
    %80 = vector.load %arg4[%c2, %c0_44, %c0_45] : memref<3x384x128xf32, #tpu.memory_space<vmem>>, vector<1x384x128xf32>
    %81 = vector.shape_cast %80 : vector<1x384x128xf32> to vector<384x128xf32>
    %cst_46 = arith.constant dense<0.000000e+00> : vector<64x128xf32>
    %82 = tpu.matmul %79, %81, %cst_46 {dimension_numbers = #tpu.dot_dimension_numbers<[1], [0], [0], [1], [0, 0, 1, 1], [], []>} : vector<64x384xf32>, vector<384x128xf32>, vector<64x128xf32> -> vector<64x128xf32>
    %c2_47 = arith.constant 2 : index
    %c0_48 = arith.constant 0 : index
    %c0_49 = arith.constant 0 : index
    %83 = vector.load %arg5[%c2_47, %c0_48, %c0_49] : memref<3x1x128xf32, #tpu.memory_space<vmem>>, vector<1x1x128xf32>
    %84 = vector.shape_cast %83 : vector<1x1x128xf32> to vector<1x128xf32>
    %85 = vector.broadcast %84 : vector<1x128xf32> to vector<64x128xf32>
    %86 = arith.addf %82, %85 : vector<64x128xf32>
    %cst_50 = arith.constant 0.000000e+00 : f32
    %87 = vector.broadcast %cst_50 : f32 to vector<64x128xf32>
    %88 = arith.maximumf %86, %87 : vector<64x128xf32>
    %cst_51 = arith.constant dense<0.000000e+00> : vector<128xf32>
    %89 = vector.multi_reduction <add>, %88, %cst_51 [0] : vector<64x128xf32> to vector<128xf32>
    %90 = vector.shape_cast %89 : vector<128xf32> to vector<1x128xf32>
    %cst_52 = arith.constant 1.562500e-02 : f32
    %91 = vector.broadcast %cst_52 : f32 to vector<1x128xf32>
    %92 = arith.mulf %90, %91 : vector<1x128xf32>
    %93 = arith.mulf %88, %88 : vector<64x128xf32>
    %cst_53 = arith.constant dense<0.000000e+00> : vector<128xf32>
    %94 = vector.multi_reduction <add>, %93, %cst_53 [0] : vector<64x128xf32> to vector<128xf32>
    %95 = vector.shape_cast %94 : vector<128xf32> to vector<1x128xf32>
    %cst_54 = arith.constant 1.562500e-02 : f32
    %96 = vector.broadcast %cst_54 : f32 to vector<1x128xf32>
    %97 = arith.mulf %95, %96 : vector<1x128xf32>
    %98 = arith.mulf %92, %92 : vector<1x128xf32>
    %99 = arith.subf %97, %98 : vector<1x128xf32>
    %100 = vector.broadcast %92 : vector<1x128xf32> to vector<64x128xf32>
    %101 = arith.subf %88, %100 : vector<64x128xf32>
    %cst_55 = arith.constant 9.99999974E-6 : f32
    %102 = vector.broadcast %cst_55 : f32 to vector<1x128xf32>
    %103 = arith.addf %99, %102 : vector<1x128xf32>
    %104 = math.rsqrt %103 : vector<1x128xf32>
    %105 = vector.broadcast %104 : vector<1x128xf32> to vector<64x128xf32>
    %106 = arith.mulf %101, %105 : vector<64x128xf32>
    %c2_56 = arith.constant 2 : index
    %c0_57 = arith.constant 0 : index
    %c0_58 = arith.constant 0 : index
    %107 = vector.load %arg6[%c2_56, %c0_57, %c0_58] : memref<3x1x128xf32, #tpu.memory_space<vmem>>, vector<1x1x128xf32>
    %108 = vector.shape_cast %107 : vector<1x1x128xf32> to vector<1x128xf32>
    %109 = vector.broadcast %108 : vector<1x128xf32> to vector<64x128xf32>
    %110 = arith.mulf %106, %109 : vector<64x128xf32>
    %c2_59 = arith.constant 2 : index
    %c0_60 = arith.constant 0 : index
    %c0_61 = arith.constant 0 : index
    %111 = vector.load %arg7[%c2_59, %c0_60, %c0_61] : memref<3x1x128xf32, #tpu.memory_space<vmem>>, vector<1x1x128xf32>
    %112 = vector.shape_cast %111 : vector<1x1x128xf32> to vector<1x128xf32>
    %113 = vector.broadcast %112 : vector<1x128xf32> to vector<64x128xf32>
    %114 = arith.addf %110, %113 : vector<64x128xf32>
    %c0_62 = arith.constant 0 : index
    %c0_63 = arith.constant 0 : index
    %115 = vector.load %arg3[%c0_62, %c0_63] : memref<8x64xbf16, #tpu.memory_space<vmem>>, vector<8x64xbf16>
    %116 = arith.extf %115 : vector<8x64xbf16> to vector<8x64xf32>
    %cst_64 = arith.constant dense<0.000000e+00> : vector<8x128xf32>
    %117 = tpu.matmul %116, %114, %cst_64 {dimension_numbers = #tpu.dot_dimension_numbers<[1], [0], [0], [1], [0, 0, 1, 1], [], []>} : vector<8x64xf32>, vector<64x128xf32>, vector<8x128xf32> -> vector<8x128xf32>
    %c0_65 = arith.constant 0 : index
    %c0_66 = arith.constant 0 : index
    %118 = vector.load %arg13[%c0_65, %c0_66] : memref<8x128xf32, #tpu.memory_space<vmem>>, vector<8x128xf32>
    tpu.vector_store %arg13[%c0_65, %c0_66], %117 {strides = array<i32>} : memref<8x128xf32, #tpu.memory_space<vmem>>, vector<8x128xf32>,
    %c0_67 = arith.constant 0 : index
    %c0_68 = arith.constant 0 : index
    %c0_69 = arith.constant 0 : index
    %119 = vector.load %arg8[%c0_67, %c0_68, %c0_69] : memref<3x128x128xf32, #tpu.memory_space<vmem>>, vector<1x128x128xf32>
    %120 = vector.shape_cast %119 : vector<1x128x128xf32> to vector<128x128xf32>
    %cst_70 = arith.constant dense<0.000000e+00> : vector<8x128xf32>
    %121 = tpu.matmul %117, %120, %cst_70 {dimension_numbers = #tpu.dot_dimension_numbers<[1], [0], [0], [1], [0, 0, 1, 1], [], []>} : vector<8x128xf32>, vector<128x128xf32>, vector<8x128xf32> -> vector<8x128xf32>
    %c0_71 = arith.constant 0 : index
    %c0_72 = arith.constant 0 : index
    %c0_73 = arith.constant 0 : index
    %122 = vector.load %arg9[%c0_71, %c0_72, %c0_73] : memref<3x1x128xf32, #tpu.memory_space<vmem>>, vector<1x1x128xf32>
    %123 = vector.shape_cast %122 : vector<1x1x128xf32> to vector<1x128xf32>
    %124 = vector.broadcast %123 : vector<1x128xf32> to vector<8x128xf32>
    %125 = arith.addf %121, %124 : vector<8x128xf32>
    %cst_74 = arith.constant 0.000000e+00 : f32
    %126 = vector.broadcast %cst_74 : f32 to vector<8x128xf32>
    %127 = arith.maximumf %125, %126 : vector<8x128xf32>
    %c1_75 = arith.constant 1 : index
    %c0_76 = arith.constant 0 : index
    %c0_77 = arith.constant 0 : index
    %128 = vector.load %arg8[%c1_75, %c0_76, %c0_77] : memref<3x128x128xf32, #tpu.memory_space<vmem>>, vector<1x128x128xf32>
    %129 = vector.shape_cast %128 : vector<1x128x128xf32> to vector<128x128xf32>
    %cst_78 = arith.constant dense<0.000000e+00> : vector<8x128xf32>
    %130 = tpu.matmul %127, %129, %cst_78 {dimension_numbers = #tpu.dot_dimension_numbers<[1], [0], [0], [1], [0, 0, 1, 1], [], []>} : vector<8x128xf32>, vector<128x128xf32>, vector<8x128xf32> -> vector<8x128xf32>
    %c1_79 = arith.constant 1 : index
    %c0_80 = arith.constant 0 : index
    %c0_81 = arith.constant 0 : index
    %131 = vector.load %arg9[%c1_79, %c0_80, %c0_81] : memref<3x1x128xf32, #tpu.memory_space<vmem>>, vector<1x1x128xf32>
    %132 = vector.shape_cast %131 : vector<1x1x128xf32> to vector<1x128xf32>
    %133 = vector.broadcast %132 : vector<1x128xf32> to vector<8x128xf32>
    %134 = arith.addf %130, %133 : vector<8x128xf32>
    %cst_82 = arith.constant 0.000000e+00 : f32
    %135 = vector.broadcast %cst_82 : f32 to vector<8x128xf32>
    %136 = arith.maximumf %134, %135 : vector<8x128xf32>
    %c2_83 = arith.constant 2 : index
    %c0_84 = arith.constant 0 : index
    %c0_85 = arith.constant 0 : index
    %137 = vector.load %arg8[%c2_83, %c0_84, %c0_85] : memref<3x128x128xf32, #tpu.memory_space<vmem>>, vector<1x128x128xf32>
    %138 = vector.shape_cast %137 : vector<1x128x128xf32> to vector<128x128xf32>
    %cst_86 = arith.constant dense<0.000000e+00> : vector<8x128xf32>
    %139 = tpu.matmul %136, %138, %cst_86 {dimension_numbers = #tpu.dot_dimension_numbers<[1], [0], [0], [1], [0, 0, 1, 1], [], []>} : vector<8x128xf32>, vector<128x128xf32>, vector<8x128xf32> -> vector<8x128xf32>
    %c2_87 = arith.constant 2 : index
    %c0_88 = arith.constant 0 : index
    %c0_89 = arith.constant 0 : index
    %140 = vector.load %arg9[%c2_87, %c0_88, %c0_89] : memref<3x1x128xf32, #tpu.memory_space<vmem>>, vector<1x1x128xf32>
    %141 = vector.shape_cast %140 : vector<1x1x128xf32> to vector<1x128xf32>
    %142 = vector.broadcast %141 : vector<1x128xf32> to vector<8x128xf32>
    %143 = arith.addf %139, %142 : vector<8x128xf32>
    %cst_90 = arith.constant 0.000000e+00 : f32
    %144 = vector.broadcast %cst_90 : f32 to vector<8x128xf32>
    %145 = arith.maximumf %143, %144 : vector<8x128xf32>
    %c0_91 = arith.constant 0 : index
    %c0_92 = arith.constant 0 : index
    %146 = vector.load %arg10[%c0_91, %c0_92] : memref<128x128xf32, #tpu.memory_space<vmem>>, vector<128x128xf32>
    %cst_93 = arith.constant dense<0.000000e+00> : vector<8x128xf32>
    %147 = tpu.matmul %145, %146, %cst_93 {dimension_numbers = #tpu.dot_dimension_numbers<[1], [0], [0], [1], [0, 0, 1, 1], [], []>} : vector<8x128xf32>, vector<128x128xf32>, vector<8x128xf32> -> vector<8x128xf32>
    %c0_94 = arith.constant 0 : index
    %c0_95 = arith.constant 0 : index
    %148 = vector.load %arg11[%c0_94, %c0_95] : memref<1x128xf32, #tpu.memory_space<vmem>>, vector<1x128xf32>
    %149 = vector.broadcast %148 : vector<1x128xf32> to vector<8x128xf32>
    %150 = arith.addf %147, %149 : vector<8x128xf32>
    %c0_96 = arith.constant 0 : index
    %c0_97 = arith.constant 0 : index
    %151 = vector.load %arg12[%c0_96, %c0_97] : memref<8x128xf32, #tpu.memory_space<vmem>>, vector<8x128xf32>
    tpu.vector_store %arg12[%c0_96, %c0_97], %150 {strides = array<i32>} : memref<8x128xf32, #tpu.memory_space<vmem>>, vector<8x128xf32>,
    return
  }
}

</mosaic_0001>

<bundles_post_ra>
// kernel: gnn_base_forward.1
= control target key start
LH: loop header
LB: loop body
LE: loop exit
PB: predicated region body
PF: predicated region fallthrough
CT: control target
= control target key end

     0   :  { %vm75_vm0 = vcmask 523264   ;;  %vm3263_vm1 = vmmov 0   ;;  %s4512_s0 = inlined_call_operand.vmem [shape: f32[64,128], index: 0, kind: input, shape index: {}]   ;;  %s4513_s1 = inlined_call_operand.vmem [shape: bf16[64,64], index: 1, kind: input, shape index: {}]   ;;  %s4514_s4 = inlined_call_operand.vmem [shape: f32[3,384,128], index: 4, kind: input, shape index: {}]   ;;  %s4515_s2 = inlined_call_operand.vmem [shape: f32[64,128], index: 2, kind: input, shape index: {}]   ;;  %s4516_s5 = inlined_call_operand.vmem [shape: f32[3,1,128], index: 5, kind: input, shape index: {}]   ;;  %s4517_s6 = inlined_call_operand.vmem [shape: f32[3,1,128], index: 6, kind: input, shape index: {}]   ;;  %s4518_s7 = inlined_call_operand.vmem [shape: f32[3,1,128], index: 7, kind: input, shape index: {}]   ;;  %s4519_s8 = inlined_call_operand.vmem [shape: f32[3,128,128], index: 8, kind: input, shape index: {}]   ;;  %s4520_s3 = inlined_call_operand.vmem [shape: bf16[8,64], index: 3, kind: input, shape index: {}]   ;;  %s4521_s13 = inlined_call_operand.vmem [shape: f32[8,128], index: 13, kind: output, shape index: {1}]   ;;  %s4522_s9 = inlined_call_operand.vmem [shape: f32[3,1,128], index: 9, kind: input, shape index: {}]   ;;  %s4523_s10 = inlined_call_operand.vmem [shape: f32[128,128], index: 10, kind: input, shape index: {}]   ;;  %s4524_s11 = inlined_call_operand.vmem [shape: f32[1,128], index: 11, kind: input, shape index: {}]   ;;  %s4525_s12 = inlined_call_operand.vmem [shape: f32[8,128], index: 12, kind: output, shape index: {0}]  }
   0x1   :  { %v3338_v0 = vld [vmem:[%s4512_s0] sm:$0xff]  ;;  %v3343_v1 = vld [vmem:[%s4512_s0 + $0x8] sm:$0xff]  ;;  %v3348_v2 = vld [vmem:[%s4512_s0 + $0x10] sm:$0xff] }
   0x2   :  { %v2897_v3 = vpack.c.bf16 %v3343_v1, %v3338_v0  ;;  %v3355_v4 = vld [vmem:[%s4512_s0 + $0x18] sm:$0xff]  ;;  %v3362_v6 = vld [vmem:[%s4512_s0 + $0x20] sm:$0xff]  ;;  %v3367_v7 = vld [vmem:[%s4512_s0 + $0x28] sm:$0xff] }
   0x3   :  { %v2901_v5 = vpack.c.bf16 %v3355_v4, %v3348_v2  ;;  %v2139_v8 = vld [vmem:[%s4513_s1] sm:$0xff]   ;;  %v222_v11 = vld [vmem:[%s4514_s4 + $0x88] sm:$0xff]  ;;  %v2905_v13 = vpack.c.bf16 %v3367_v7, %v3362_v6  ;;  %v223_v16 = vld [vmem:[%s4514_s4 + $0x90] sm:$0xff] }
   0x4   :  { %2898 = vmatprep.subr.bf16.mxu0 %v2897_v3  ;;  %v3372_v9 = vunpack.c.l.bf16 %v2139_v8  ;;  %v221_v10 = vld [vmem:[%s4514_s4 + $0x80] sm:$0xff]  ;;  %v206_v15 = vld [vmem:[%s4514_s4 + $0x8] sm:$0xff]  ;;  %v224_v17 = vld [vmem:[%s4514_s4 + $0x98] sm:$0xff]  ;;  %v3453_v43 = vunpack.c.h.bf16 %v2139_v8 }
   0x5   :  { %2900 = vmatpush3.bf16.msra.mxu0 %v2897_v3  ;;  %v205_v12 = vld [vmem:[%s4514_s4] sm:$0xff]  ;;  %v2913_v14 = vpack.c.bf16 %v222_v11, %v221_v10  ;;  %v3399_v18 = vld [vmem:[%s4512_s0 + $0x30] sm:$0xff]  ;;  %v3404_v19 = vld [vmem:[%s4512_s0 + $0x38] sm:$0xff]  ;;  %v2917_v21 = vpack.c.bf16 %v224_v17, %v223_v16 }
   0x6   :  { %2902 = vmatprep.subr.bf16.mxu0 %v2901_v5  ;;  %2538 = vmatprep.mubr.msk.f32.mxu0 %vm75_vm0, %v3372_v9  ;;  %v2915_v20 = vpack.c.bf16 %v206_v15, %v205_v12  ;;  %v207_v22 = vld [vmem:[%s4514_s4 + $0x10] sm:$0xff]  ;;  %v208_v23 = vld [vmem:[%s4514_s4 + $0x18] sm:$0xff]  ;;  %v225_v24 = vld [vmem:[%s4514_s4 + $0xa0] sm:$0xff]  ;;  %v2909_v27 = vpack.c.bf16 %v3404_v19, %v3399_v18 }
   0x7   :  { %2914 = vmatprep.subr.bf16.mxu1 %v2913_v14  ;;  %v226_v25 = vld [vmem:[%s4514_s4 + $0xa8] sm:$0xff]  ;;  %v2919_v26 = vpack.c.bf16 %v208_v23, %v207_v22  ;;  %v237_v28 = vld [vmem:[%s4514_s4 + $0x100] sm:$0xff]  ;;  %v227_v33 = vld [vmem:[%s4514_s4 + $0xb0] sm:$0xff] }
   0x8   :  { %2916 = vmatpush3.bf16.msra.mxu1 %v2915_v20  ;;  %v2921_v29 = vpack.c.bf16 %v226_v25, %v225_v24  ;;  %v209_v30 = vld [vmem:[%s4514_s4 + $0x20] sm:$0xff]  ;;  %v210_v31 = vld [vmem:[%s4514_s4 + $0x28] sm:$0xff]  ;;  %v228_v34 = vld [vmem:[%s4514_s4 + $0xb8] sm:$0xff] }
   0x9   :  { %2904 = vmatpush3.bf16.msra.mxu0 %v2901_v5  ;;  %2918 = vmatprep.subr.bf16.mxu1 %v2917_v21  ;;  %v238_v32 = vld [vmem:[%s4514_s4 + $0x108] sm:$0xff]  ;;  %v2923_v35 = vpack.c.bf16 %v210_v31, %v209_v30  ;;  %v239_v38 = vld [vmem:[%s4514_s4 + $0x110] sm:$0xff]  ;;  %v2925_v39 = vpack.c.bf16 %v228_v34, %v227_v33  ;;  %v240_v40 = vld [vmem:[%s4514_s4 + $0x118] sm:$0xff] }
   0xa   :  { %2906 = vmatprep.subr.bf16.mxu0 %v2905_v13  ;;  %v2154_v36 = vld [vmem:[%s4513_s1 + $0x8] sm:$0xff]   ;;  %v2945_v37 = vpack.c.bf16 %v238_v32, %v237_v28  ;;  %v211_v41 = vld [vmem:[%s4514_s4 + $0x30] sm:$0xff]  ;;  %v212_v42 = vld [vmem:[%s4514_s4 + $0x38] sm:$0xff]  ;;  %v2949_v48 = vpack.c.bf16 %v240_v40, %v239_v38 }
   0xb   :  { %v229_v44 = vld [vmem:[%s4514_s4 + $0xc0] sm:$0xff]  ;;  %v230_v45 = vld [vmem:[%s4514_s4 + $0xc8] sm:$0xff]  ;;  %v3461_v46 = vunpack.c.l.bf16 %v2154_v36  ;;  %v2155_v47 = vld [vmem:[%s4513_s1 + $0x10] sm:$0xff]   ;;  %v2927_v50 = vpack.c.bf16 %v212_v42, %v211_v41  ;;  %v3480_v55 = vunpack.c.h.bf16 %v2154_v36 }
   0xc   :  { %2920 = vmatpush3.bf16.msra.mxu1 %v2919_v26  ;;  %v241_v49 = vld [vmem:[%s4514_s4 + $0x120] sm:$0xff]  ;;  %v242_v51 = vld [vmem:[%s4514_s4 + $0x128] sm:$0xff]  ;;  %v2929_v52 = vpack.c.bf16 %v230_v45, %v229_v44  ;;  %v231_v56 = vld [vmem:[%s4514_s4 + $0xd0] sm:$0xff]  ;;  %v3490_v58 = vunpack.c.l.bf16 %v2155_v47  ;;  %v3509_v10 = vunpack.c.h.bf16 %v2155_v47 }
   0xd   :  { %2908 = vmatpush3.bf16.msra.mxu0 %v2905_v13  ;;  %2922 = vmatprep.subr.bf16.mxu1 %v2921_v29  ;;  %v213_v53 = vld [vmem:[%s4514_s4 + $0x40] sm:$0xff]  ;;  %v214_v54 = vld [vmem:[%s4514_s4 + $0x48] sm:$0xff]  ;;  %v232_v57 = vld [vmem:[%s4514_s4 + $0xd8] sm:$0xff]  ;;  %v2953_v60 = vpack.c.bf16 %v242_v51, %v241_v49 }
   0xe   :  { %2910 = vmatprep.subr.bf16.mxu0 %v2909_v27  ;;  %v2156_v59 = vld [vmem:[%s4513_s1 + $0x18] sm:$0xff]   ;;  %v243_v61 = vld [vmem:[%s4514_s4 + $0x130] sm:$0xff]  ;;  %v2931_v62 = vpack.c.bf16 %v214_v54, %v213_v53  ;;  %v2933_v3 = vpack.c.bf16 %v232_v57, %v231_v56  ;;  %v233_v11 = vld [vmem:[%s4514_s4 + $0xe0] sm:$0xff] }
   0xf   :  { %v244_v63 = vld [vmem:[%s4514_s4 + $0x138] sm:$0xff]  ;;  %v215_v5 = vld [vmem:[%s4514_s4 + $0x50] sm:$0xff]  ;;  %v234_v12 = vld [vmem:[%s4514_s4 + $0xe8] sm:$0xff]  ;;  %v3519_v13 = vunpack.c.l.bf16 %v2156_v59  ;;  %v3535_v23 = vunpack.c.h.bf16 %v2156_v59 }
  0x10   :  { %2924 = vmatpush3.bf16.msra.mxu1 %v2923_v35  ;;  %v216_v8 = vld [vmem:[%s4514_s4 + $0x58] sm:$0xff]  ;;  %v2957_v14 = vpack.c.bf16 %v244_v63, %v243_v61  ;;  %v245_v15 = vld [vmem:[%s4514_s4 + $0x140] sm:$0xff]  ;;  %v246_v17 = vld [vmem:[%s4514_s4 + $0x148] sm:$0xff]  ;;  %v2937_v20 = vpack.c.bf16 %v234_v12, %v233_v11 }
  0x11   :  { %2912 = vmatpush3.bf16.msra.mxu0 %v2909_v27  ;;  %2926 = vmatprep.subr.bf16.mxu1 %v2925_v39  ;;  %v2935_v16 = vpack.c.bf16 %v216_v8, %v215_v5  ;;  %v217_v21 = vld [vmem:[%s4514_s4 + $0x60] sm:$0xff]  ;;  %v218_v22 = vld [vmem:[%s4514_s4 + $0x68] sm:$0xff]  ;;  %v235_v24 = vld [vmem:[%s4514_s4 + $0xf0] sm:$0xff]  ;;  %v2961_v26 = vpack.c.bf16 %v246_v17, %v245_v15 }
  0x12   :  { %2946 = vmatprep.subr.bf16.mxu0 %v2945_v37  ;;  %v236_v25 = vld [vmem:[%s4514_s4 + $0xf8] sm:$0xff]  ;;  %v2939_v27 = vpack.c.bf16 %v218_v22, %v217_v21  ;;  %v247_v28 = vld [vmem:[%s4514_s4 + $0x150] sm:$0xff]  ;;  %v249_v32 = vld [vmem:[%s4514_s4 + $0x160] sm:$0xff] }
  0x13   :  { %v248_v29 = vld [vmem:[%s4514_s4 + $0x158] sm:$0xff]  ;;  %v2941_v30 = vpack.c.bf16 %v236_v25, %v235_v24  ;;  %v250_v33 = vld [vmem:[%s4514_s4 + $0x168] sm:$0xff]  ;;  %v219_v35 = vld [vmem:[%s4514_s4 + $0x70] sm:$0xff] }
  0x14   :  { %2539 = vmatmul.mubr.msk.f32.vlgmr.msra.gmra.mrb[0].mxu0 %vm75_vm0, %v3453_v43  ;;  %2928 = vmatpush3.bf16.msra.mxu1 %v2927_v50  ;;  %v2965_v31 = vpack.c.bf16 %v248_v29, %v247_v28  ;;  %v2969_v34 = vpack.c.bf16 %v250_v33, %v249_v32  ;;  %v220_v36 = vld [vmem:[%s4514_s4 + $0x78] sm:$0xff]  ;;  %v251_v38 = vld [vmem:[%s4514_s4 + $0x170] sm:$0xff]  ;;  %v3574_v41 = vld [vmem:[%s4515_s2] sm:$0xff] }
  0x15   :  { %2541 = vmatprep.mubr.msk.f32.mxu0 %vm75_vm0, %v3461_v46  ;;  %2948 = vmatpush3.bf16.msra.mxu0 %v2945_v37  ;;  %v2943_v37 = vpack.c.bf16 %v220_v36, %v219_v35  ;;  %v252_v39 = vld [vmem:[%s4514_s4 + $0x178] sm:$0xff]  ;;  %v3580_v42 = vld [vmem:[%s4515_s2 + $0x8] sm:$0xff]  ;;  %v3586_v44 = vld [vmem:[%s4515_s2 + $0x10] sm:$0xff] }
  0x16   :  { %2950 = vmatprep.subr.bf16.mxu0 %v2949_v48  ;;  %2930 = vmatprep.subr.bf16.mxu1 %v2929_v52  ;;  %v2973_v40 = vpack.c.bf16 %v252_v39, %v251_v38  ;;  %v3592_v45 = vld [vmem:[%s4515_s2 + $0x18] sm:$0xff]  ;;  %v3598_v47 = vld [vmem:[%s4515_s2 + $0x20] sm:$0xff]  ;;  %v3610_v49 = vld [vmem:[%s4515_s2 + $0x30] sm:$0xff] }
  0x17   :  { %v3616_v50 = vld [vmem:[%s4515_s2 + $0x38] sm:$0xff]  ;;  %v1983_v63 = vld [vmem:[%s4514_s4 + $0x180] sm:$0xff]  ;;  %v1984_v5 = vld [vmem:[%s4514_s4 + $0x188] sm:$0xff] }
  0x18   :  { %2542 = vmatmul.mubr.msk.f32.gmra.mrb[2].mxu0 %vm75_vm0, %v3480_v55  ;;  %2932 = vmatpush3.bf16.msra.mxu1 %v2931_v62  ;;  %v2001_v8 = vld [vmem:[%s4514_s4 + $0x210] sm:$0xff]  ;;  %v2002_v11 = vld [vmem:[%s4514_s4 + $0x218] sm:$0xff]  ;;  %v2995_v12 = vpack.c.bf16 %v1984_v5, %v1983_v63  ;;  %v2003_v17 = vld [vmem:[%s4514_s4 + $0x220] sm:$0xff] }
  0x19   :  { %2544 = vmatprep.mubr.msk.f32.mxu0 %vm75_vm0, %v3490_v58  ;;  %2952 = vmatpush3.bf16.msra.mxu0 %v2949_v48  ;;  %v3604_v48 = vld [vmem:[%s4515_s2 + $0x28] sm:$0xff]  ;;  %v1985_v15 = vld [vmem:[%s4514_s4 + $0x190] sm:$0xff]  ;;  %v1987_v24 = vld [vmem:[%s4514_s4 + $0x1a0] sm:$0xff] }
  0x1a   :  { %2954 = vmatprep.subr.bf16.mxu0 %v2953_v60  ;;  %2934 = vmatprep.subr.bf16.mxu1 %v2933_v3  ;;  %v1988_v25 = vld [vmem:[%s4514_s4 + $0x1a8] sm:$0xff]  ;;  %v2007_v32 = vld [vmem:[%s4514_s4 + $0x240] sm:$0xff]  ;;  %v2009_v38 = vld [vmem:[%s4514_s4 + $0x250] sm:$0xff] }
  0x1b   :  { %v3003_v28 = vpack.c.bf16 %v1988_v25, %v1987_v24  ;;  %v2008_v33 = vld [vmem:[%s4514_s4 + $0x248] sm:$0xff]  ;;  %v1991_v36 = vld [vmem:[%s4514_s4 + $0x1c0] sm:$0xff]  ;;  %v2010_v39 = vld [vmem:[%s4514_s4 + $0x258] sm:$0xff] }
  0x1c   :  { %2545 = vmatmul.mubr.msk.f32.gmra.mrb[4].mxu0 %vm75_vm0, %v3509_v10  ;;  %2936 = vmatpush3.bf16.msra.mxu1 %v2935_v16  ;;  %v1986_v16 = vld [vmem:[%s4514_s4 + $0x198] sm:$0xff]  ;;  %v3009_v35 = vpack.c.bf16 %v2008_v33, %v2007_v32  ;;  %v2013_v5 = vld [vmem:[%s4514_s4 + $0x270] sm:$0xff] }
  0x1d   :  { %2547 = vmatprep.mubr.msk.f32.mxu0 %vm75_vm0, %v3519_v13  ;;  %2956 = vmatpush3.bf16.msra.mxu0 %v2953_v60  ;;  %v2999_v21 = vpack.c.bf16 %v1986_v16, %v1985_v15 }
  0x1e   :  { %2958 = vmatprep.subr.bf16.mxu0 %v2957_v14  ;;  %2938 = vmatprep.subr.bf16.mxu1 %v2937_v20  ;;  %v2004_v20 = vld [vmem:[%s4514_s4 + $0x228] sm:$0xff] }
  0x1f   :  { %v3001_v22 = vpack.c.bf16 %v2004_v20, %v2003_v17 }
  0x20   :  { %2548 = vmatmul.mubr.msk.f32.gmra.mrb[6].mxu0 %vm75_vm0, %v3535_v23  ;;  %2940 = vmatpush3.bf16.msra.mxu1 %v2939_v27  ;;  %v2006_v27 = vld [vmem:[%s4514_s4 + $0x238] sm:$0xff] }
  0x21   :  { %2960 = vmatpush3.bf16.msra.mxu0 %v2957_v14  ;;  %2942 = vmatprep.subr.bf16.mxu1 %v2941_v30  ;;  %v2997_v14 = vpack.c.bf16 %v2002_v11, %v2001_v8  ;;  %v1989_v30 = vld [vmem:[%s4514_s4 + $0x1b0] sm:$0xff]  ;;  %v2014_v8 = vld [vmem:[%s4514_s4 + $0x278] sm:$0xff] }
  0x22   :  { %2962 = vmatprep.subr.bf16.mxu0 %v2961_v26  ;;  %2582 = vmatprep.mubr.f32.mxu0 %v3574_v41  ;;  %v3021_v16 = vpack.c.bf16 %v2014_v8, %v2013_v5 }
  0x24   :  { %2944 = vmatpush3.bf16.msra.mxu1 %v2943_v37  ;;  %v1992_v37 = vld [vmem:[%s4514_s4 + $0x1c8] sm:$0xff] }
  0x25   :  { %2964 = vmatpush3.bf16.msra.mxu0 %v2961_v26  ;;  %v2005_v26 = vld [vmem:[%s4514_s4 + $0x230] sm:$0xff] }
  0x26   :  { %2966 = vmatprep.subr.bf16.mxu0 %v2965_v31  ;;  %v3005_v29 = vpack.c.bf16 %v2006_v27, %v2005_v26 }
  0x29   :  { %2968 = vmatpush3.bf16.msra.mxu0 %v2965_v31  ;;  %v1990_v31 = vld [vmem:[%s4514_s4 + $0x1b8] sm:$0xff] }
  0x2a   :  { %2970 = vmatprep.subr.bf16.mxu0 %v2969_v34 }
  0x2d   :  { %2972 = vmatpush3.bf16.msra.mxu0 %v2969_v34  ;;  %v3007_v34 = vpack.c.bf16 %v1990_v31, %v1989_v30 }
  0x2e   :  { %2974 = vmatprep.subr.bf16.mxu0 %v2973_v40 }
  0x31   :  { %2976 = vmatpush3.bf16.msra.mxu0 %v2973_v40  ;;  %v3011_v40 = vpack.c.bf16 %v1992_v37, %v1991_v36 }
  0x34   :  { %2583 = vmatmul.mubr.f32.vlgmr.msra.gmra.mrb[8].mxu0 %v3580_v42 }
  0x35   :  { %2585 = vmatprep.mubr.f32.mxu0 %v3586_v44 }
  0x38   :  { %2586 = vmatmul.mubr.f32.gmra.mrb[10].mxu0 %v3592_v45 }
  0x39   :  { %2588 = vmatprep.mubr.f32.mxu0 %v3598_v47 }
  0x3c   :  { %2589 = vmatmul.mubr.f32.gmra.mrb[12].mxu0 %v3604_v48 }
  0x3d   :  { %2591 = vmatprep.mubr.f32.mxu0 %v3610_v49 }
  0x40   :  { %2592 = vmatmul.mubr.f32.gmra.mrb[14].mxu0 %v3616_v50 }
  0x41   :  { %2610 = vmatprep.mubr.msk.f32.mxu0 %vm75_vm0, %v3372_v9 }
  0xe7   :  { %v2540_v51 = vpop.f32.mrb[0].mxu0 }
  0xe8   :  { %v166_v52 = vpop.f32.mrb[1].mxu0 }
  0xe9   :  { %324 = vmatprep.mubr.f32.mxu1 %v166_v52  ;;  %v1993_v52 = vld [vmem:[%s4514_s4 + $0x1d0] sm:$0xff] }
  0xea   :  { %325 = vmatmul.mubr.f32.vlgmr.msra.gmra.mrb[0].mxu1 %v3338_v0 }
  0xeb   :  { %329 = vmatprep.mubr.f32.mxu1 %v2540_v51  ;;  %v2543_v53 = vpop.f32.mrb[2].mxu0  ;;  %v3013_v51 = vpack.c.bf16 %v2010_v39, %v2009_v38 }
  0xec   :  { %v176_v54 = vpop.f32.mrb[3].mxu0 }
  0xee   :  { %330 = vmatmul.mubr.f32.gmra.mrb[2].mxu1 %v3343_v1 }
  0xef   :  { %334 = vmatprep.mubr.f32.mxu1 %v176_v54  ;;  %v2546_v56 = vpop.f32.mrb[4].mxu0  ;;  %v2011_v54 = vld [vmem:[%s4514_s4 + $0x260] sm:$0xff] }
  0xf0   :  { %v186_v57 = vpop.f32.mrb[5].mxu0 }
  0xf2   :  { %335 = vmatmul.mubr.f32.gmra.mrb[4].mxu1 %v3348_v2 }
  0xf3   :  { %339 = vmatprep.mubr.f32.mxu1 %v2543_v53  ;;  %v2549_v59 = vpop.f32.mrb[6].mxu0  ;;  %v1994_v53 = vld [vmem:[%s4514_s4 + $0x1d8] sm:$0xff] }
  0xf4   :  { %v196_v60 = vpop.f32.mrb[7].mxu0 }
  0xf6   :  { %340 = vmatmul.mubr.f32.gmra.mrb[6].mxu1 %v3355_v4 }
  0xf7   :  { %344 = vmatprep.mubr.f32.mxu1 %v186_v57  ;;  %v3015_v57 = vpack.c.bf16 %v1994_v53, %v1993_v52 }
  0xfa   :  { %345 = vmatmul.mubr.f32.gmra.mrb[8].mxu1 %v3362_v6 }
  0xfb   :  { %349 = vmatprep.mubr.f32.mxu1 %v2546_v56  ;;  %v2012_v56 = vld [vmem:[%s4514_s4 + $0x268] sm:$0xff] }
  0xfe   :  { %350 = vmatmul.mubr.f32.gmra.mrb[10].mxu1 %v3367_v7 }
  0xff   :  { %354 = vmatprep.mubr.f32.mxu1 %v196_v60  ;;  %v3017_v60 = vpack.c.bf16 %v2012_v56, %v2011_v54 }
 0x102   :  { %355 = vmatmul.mubr.f32.gmra.mrb[12].mxu1 %v3399_v18  ;;  %v1999_v18 = vld [vmem:[%s4514_s4 + $0x200] sm:$0xff] }
 0x103   :  { %359 = vmatprep.mubr.f32.mxu1 %v2549_v59 }
 0x106   :  { %360 = vmatmul.mubr.f32.gmra.mrb[14].mxu1 %v3404_v19  ;;  %v2000_v19 = vld [vmem:[%s4514_s4 + $0x208] sm:$0xff] }
 0x107   :  { %v3629_v0 = vpop.f32.mrb[8].mxu0  ;;  %v2993_v3 = vpack.c.bf16 %v2000_v19, %v1999_v18  ;;  %v1995_v18 = vld [vmem:[%s4514_s4 + $0x1e0] sm:$0xff]  ;;  %v1996_v19 = vld [vmem:[%s4514_s4 + $0x1e8] sm:$0xff] }
 0x108   :  { %v3631_v1 = vpop.f32.mrb[9].mxu0 }
 0x109   :  { %2994 = vmatprep.subr.bf16.mxu1 %v2993_v3  ;;  %v3732_v3 = vld [vmem:[%s4516_s5] ss:$0 sm:$0xff] }
 0x10a   :  { %2996 = vmatpush3.bf16.msra.mxu1 %v2995_v12  ;;  %v3019_v12 = vpack.c.bf16 %v1996_v19, %v1995_v18 }
 0x10b   :  { %v3633_v2 = vpop.f32.mrb[10].mxu0  ;;  %2998 = vmatprep.subr.bf16.mxu1 %v2997_v14 }
 0x10c   :  { %v3635_v61 = vpop.f32.mrb[11].mxu0 }
 0x10e   :  { %3000 = vmatpush3.bf16.msra.mxu1 %v2999_v21 }
 0x10f   :  { %v3637_v4 = vpop.f32.mrb[12].mxu0  ;;  %3002 = vmatprep.subr.bf16.mxu1 %v3001_v22 }
 0x110   :  { %v3639_v6 = vpop.f32.mrb[13].mxu0 }
 0x112   :  { %3004 = vmatpush3.bf16.msra.mxu1 %v3003_v28 }
 0x113   :  { %v3641_v62 = vpop.f32.mrb[14].mxu0  ;;  %3006 = vmatprep.subr.bf16.mxu1 %v3005_v29 }
 0x114   :  { %v3643_v7 = vpop.f32.mrb[15].mxu0 }
 0x116   :  { %3008 = vmatpush3.bf16.msra.mxu1 %v3007_v34 }
 0x117   :  { %3010 = vmatprep.subr.bf16.mxu1 %v3009_v35 }
 0x11a   :  { %3012 = vmatpush3.bf16.msra.mxu1 %v3011_v40 }
 0x11b   :  { %3014 = vmatprep.subr.bf16.mxu1 %v3013_v51 }
 0x11e   :  { %3016 = vmatpush3.bf16.msra.mxu1 %v3015_v57 }
 0x11f   :  { %3018 = vmatprep.subr.bf16.mxu1 %v3017_v60 }
 0x122   :  { %3020 = vmatpush3.bf16.msra.mxu1 %v3019_v12 }
 0x123   :  { %3022 = vmatprep.subr.bf16.mxu1 %v3021_v16 }
 0x1bd   :  { %v2205_v59 = vpop.f32.mrb[0].mxu1 }
 0x1be   :  { %v2206_v63 = vpop.f32.mrb[1].mxu1 }
 0x1bf   :  { %v2207_v11 = vadd.f32 %v2206_v63, %v2205_v59 }
 0x1c1   :  { %v2208_v14 = vpop.f32.mrb[2].mxu1  ;;  %v327_v15 = vadd.f32 %v2207_v11, %v3732_v3 }
 0x1c2   :  { %v2209_v17 = vpop.f32.mrb[3].mxu1 }
 0x1c3   :  { %v2210_v20 = vadd.f32 %v2209_v17, %v2208_v14  ;;  %v432_v21 = vadd.f32 %v3631_v1, %v327_v15 }
 0x1c5   :  { %v332_v22 = vadd.f32 %v2210_v20, %v3732_v3  ;;  %v2211_v24 = vpop.f32.mrb[4].mxu1  ;;  %v3743_v25 = vmax.f32 %v432_v21, 0.0 }
 0x1c6   :  { %v2212_v26 = vpop.f32.mrb[5].mxu1 }
 0x1c7   :  { %v437_v27 = vadd.f32 %v3629_v0, %v332_v22  ;;  %v2213_v28 = vadd.f32 %v2212_v26, %v2211_v24  ;;  %v492_v32 = vmul.f32 %v3743_v25, %v3743_v25 }
 0x1c9   :  { %v3746_v29 = vmax.f32 %v437_v27, 0.0  ;;  %v2214_v30 = vpop.f32.mrb[6].mxu1  ;;  %v337_v31 = vadd.f32 %v2213_v28, %v3732_v3 }
 0x1ca   :  { %v2215_v1 = vpop.f32.mrb[7].mxu1 }
 0x1cb   :  { %v478_v33 = vadd.f32 %v3746_v29, %v3743_v25  ;;  %v493_v34 = vmul.f32 %v3746_v29, %v3746_v29  ;;  %v2216_v35 = vadd.f32 %v2215_v1, %v2214_v30  ;;  %v442_v36 = vadd.f32 %v3635_v61, %v337_v31 }
 0x1cd   :  { %v500_v0 = vadd.f32 %v493_v34, %v492_v32  ;;  %v342_v37 = vadd.f32 %v2216_v35, %v3732_v3  ;;  %v3757_v38 = vmax.f32 %v442_v36, 0.0  ;;  %v2217_v39 = vpop.f32.mrb[8].mxu1 }
 0x1ce   :  { %v2218_v40 = vpop.f32.mrb[9].mxu1 }
 0x1cf   :  { %v447_v51 = vadd.f32 %v3633_v2, %v342_v37  ;;  %v479_v52 = vadd.f32 %v478_v33, %v3757_v38  ;;  %v494_v53 = vmul.f32 %v3757_v38, %v3757_v38  ;;  %v2219_v54 = vadd.f32 %v2218_v40, %v2217_v39 }
 0x1d1   :  { %v3763_v56 = vmax.f32 %v447_v51, 0.0  ;;  %v501_v57 = vadd.f32 %v500_v0, %v494_v53  ;;  %v2220_v59 = vpop.f32.mrb[10].mxu1  ;;  %v347_v61 = vadd.f32 %v2219_v54, %v3732_v3 }
 0x1d2   :  { %v2221_v60 = vpop.f32.mrb[11].mxu1 }
 0x1d3   :  { %v495_v18 = vmul.f32 %v3763_v56, %v3763_v56  ;;  %v2222_v19 = vadd.f32 %v2221_v60, %v2220_v59  ;;  %v452_v63 = vadd.f32 %v3639_v6, %v347_v61  ;;  %v480_v2 = vadd.f32 %v479_v52, %v3763_v56 }
 0x1d5   :  { %v352_v5 = vadd.f32 %v2222_v19, %v3732_v3  ;;  %v3771_v8 = vmax.f32 %v452_v63, 0.0  ;;  %v502_v11 = vadd.f32 %v501_v57, %v495_v18  ;;  %v2223_v12 = vpop.f32.mrb[12].mxu1 }
 0x1d6   :  { %v2224_v14 = vpop.f32.mrb[13].mxu1 }
 0x1d7   :  { %v457_v15 = vadd.f32 %v3637_v4, %v352_v5  ;;  %v481_v16 = vadd.f32 %v480_v2, %v3771_v8  ;;  %v496_v17 = vmul.f32 %v3771_v8, %v3771_v8  ;;  %v2225_v20 = vadd.f32 %v2224_v14, %v2223_v12 }
 0x1d9   :  { %v475_v21 = vmax.f32 %v457_v15, 0.0  ;;  %v503_v22 = vadd.f32 %v502_v11, %v496_v17  ;;  %v2226_v6 = vpop.f32.mrb[14].mxu1  ;;  %v357_v24 = vadd.f32 %v2225_v20, %v3732_v3 }
 0x1da   :  { %v2227_v26 = vpop.f32.mrb[15].mxu1 }
 0x1db   :  { %v497_v27 = vmul.f32 %v475_v21, %v475_v21  ;;  %v2228_v28 = vadd.f32 %v2227_v26, %v2226_v6  ;;  %v462_v30 = vadd.f32 %v3643_v7, %v357_v24  ;;  %v482_v31 = vadd.f32 %v481_v16, %v475_v21  ;;  %v1973_v26 = vld [vmem:[%s4517_s6] ss:$0 sm:$0xff] }
 0x1dd   :  { %v362_v32 = vadd.f32 %v2228_v28, %v3732_v3  ;;  %v476_v4 = vmax.f32 %v462_v30, 0.0  ;;  %v504_v1 = vadd.f32 %v503_v22, %v497_v27 }
 0x1df   :  { %v467_v33 = vadd.f32 %v3641_v62, %v362_v32  ;;  %v483_v34 = vadd.f32 %v482_v31, %v476_v4  ;;  %v498_v35 = vmul.f32 %v476_v4, %v476_v4 }
 0x1e1   :  { %v477_v36 = vmax.f32 %v467_v33, 0.0  ;;  %v505_v0 = vadd.f32 %v504_v1, %v498_v35 }
 0x1e3   :  { %v499_v37 = vmul.f32 %v477_v36, %v477_v36  ;;  %v484_v39 = vadd.f32 %v483_v34, %v477_v36 }
 0x1e5   :  { %v485_v40 = vrot.slane %v484_v39, 4  ;;  %v506_v51 = vadd.f32 %v505_v0, %v499_v37 }
 0x1e7   :  { %v486_v52 = vadd.f32 %v485_v40, %v484_v39  ;;  %v507_v53 = vrot.slane %v506_v51, 4 }
 0x1e9   :  { %v487_v54 = vrot.slane %v486_v52, 2  ;;  %v508_v57 = vadd.f32 %v507_v53, %v506_v51 }
 0x1eb   :  { %v488_v7 = vadd.f32 %v487_v54, %v486_v52  ;;  %v509_v59 = vrot.slane %v508_v57, 2 }
 0x1ed   :  { %v489_v61 = vrot.slane %v488_v7, 1  ;;  %v510_v3 = vadd.f32 %v509_v59, %v508_v57 }
 0x1ef   :  { %v490_v60 = vadd.f32 %v489_v61, %v488_v7  ;;  %v511_v18 = vrot.slane %v510_v3, 1  ;;  %v2015_v61 = vld [vmem:[%s4514_s4 + $0x280] sm:$0xff] }
 0x1f1   :  { %v491_v19 = vmul.f32 0.015625, %v490_v60  ;;  %v512_v62 = vadd.f32 %v511_v18, %v510_v3  ;;  %v2016_v3 = vld [vmem:[%s4514_s4 + $0x288] sm:$0xff] }
 0x1f2   :  { %v3025_v18 = vpack.c.bf16 %v2016_v3, %v2015_v61 }
 0x1f3   :  { %v513_v63 = vmul.f32 0.015625, %v512_v62  ;;  %v514_v2 = vmul.f32 %v491_v19, %v491_v19  ;;  %v522_v5 = vsub.f32 %v476_v4, %v491_v19  ;;  %v516_v11 = vsub.f32 %v3743_v25, %v491_v19  ;;  %v2018_v62 = vld [vmem:[%s4514_s4 + $0x298] sm:$0xff] }
 0x1f4   :  { %v517_v12 = vsub.f32 %v3746_v29, %v491_v19  ;;  %v518_v14 = vsub.f32 %v3757_v38, %v491_v19  ;;  %v519_v15 = vsub.f32 %v3763_v56, %v491_v19  ;;  %v520_v16 = vsub.f32 %v3771_v8, %v491_v19  ;;  %v1974_v38 = vld [vmem:[%s4518_s7] ss:$0 sm:$0xff] }
 0x1f5   :  { %v515_v17 = vsub.f32 %v513_v63, %v514_v2  ;;  %v521_v20 = vsub.f32 %v475_v21, %v491_v19  ;;  %v523_v22 = vsub.f32 %v477_v36, %v491_v19  ;;  %v2017_v19 = vld [vmem:[%s4514_s4 + $0x290] sm:$0xff]  ;;  %v2019_v2 = vld [vmem:[%s4514_s4 + $0x2a0] sm:$0xff] }
 0x1f6   :  { %v3029_v63 = vpack.c.bf16 %v2018_v62, %v2017_v19  ;;  %v2067_v19 = vld [vmem:[%s4514_s4 + $0x3b0] sm:$0xff]  ;;  %v2068_v62 = vld [vmem:[%s4514_s4 + $0x3b8] sm:$0xff] }
 0x1f7   :  { %v524_v6 = vadd.f32 1e-05, %v515_v17  ;;  %v2024_v17 = vld [vmem:[%s4514_s4 + $0x2c8] sm:$0xff] }
 0x1f9   :  { %3248 = vrsqrt.f32 %v524_v6  ;;  %v2026_v6 = vld [vmem:[%s4514_s4 + $0x2d8] sm:$0xff] }
 0x203   :  { %v3249_v24 = vpop.eup %3248 }
 0x204   :  { %v532_v27 = vmul.f32 %v3249_v24, %v522_v5  ;;  %v526_v25 = vmul.f32 %v3249_v24, %v516_v11  ;;  %v527_v28 = vmul.f32 %v3249_v24, %v517_v12  ;;  %v528_v29 = vmul.f32 %v3249_v24, %v518_v14  ;;  %v2020_v5 = vld [vmem:[%s4514_s4 + $0x2a8] sm:$0xff]  ;;  %v2021_v12 = vld [vmem:[%s4514_s4 + $0x2b0] sm:$0xff]  ;;  %v2022_v14 = vld [vmem:[%s4514_s4 + $0x2b8] sm:$0xff] }
 0x205   :  { %v529_v56 = vmul.f32 %v3249_v24, %v519_v15  ;;  %v530_v8 = vmul.f32 %v3249_v24, %v520_v16  ;;  %v531_v30 = vmul.f32 %v3249_v24, %v521_v20  ;;  %v533_v21 = vmul.f32 %v3249_v24, %v523_v22  ;;  %v2023_v16 = vld [vmem:[%s4514_s4 + $0x2c0] sm:$0xff]  ;;  %v2025_v22 = vld [vmem:[%s4514_s4 + $0x2d0] sm:$0xff] }
 0x206   :  { %v541_v31 = vmul.f32 %v1973_v26, %v526_v25  ;;  %v542_v32 = vmul.f32 %v1973_v26, %v527_v28  ;;  %v543_v4 = vmul.f32 %v1973_v26, %v528_v29  ;;  %v547_v40 = vmul.f32 %v1973_v26, %v532_v27  ;;  %v2028_v27 = vld [vmem:[%s4514_s4 + $0x2e8] sm:$0xff]  ;;  %v1998_v28 = vld [vmem:[%s4514_s4 + $0x1f8] sm:$0xff] }
 0x207   :  { %v544_v1 = vmul.f32 %v1973_v26, %v529_v56  ;;  %v545_v33 = vmul.f32 %v1973_v26, %v530_v8  ;;  %v546_v0 = vmul.f32 %v1973_v26, %v531_v30  ;;  %v548_v54 = vmul.f32 %v1973_v26, %v533_v21  ;;  %v2027_v26 = vld [vmem:[%s4514_s4 + $0x2e0] sm:$0xff]  ;;  %v2030_v56 = vld [vmem:[%s4514_s4 + $0x2f8] sm:$0xff] }
 0x208   :  { %v3792_v34 = vadd.f32 %v1974_v38, %v541_v31  ;;  %v3794_v35 = vadd.f32 %v1974_v38, %v542_v32  ;;  %v3796_v36 = vadd.f32 %v1974_v38, %v543_v4  ;;  %v3810_v7 = vadd.f32 %v1974_v38, %v547_v40  ;;  %v2063_v40 = vld [vmem:[%s4514_s4 + $0x390] sm:$0xff] }
 0x209   :  { %v3798_v37 = vadd.f32 %v1974_v38, %v544_v1  ;;  %v3804_v52 = vadd.f32 %v1974_v38, %v545_v33  ;;  %v3806_v53 = vadd.f32 %v1974_v38, %v546_v0  ;;  %v3812_v59 = vadd.f32 %v1974_v38, %v548_v54  ;;  %v2029_v38 = vld [vmem:[%s4514_s4 + $0x2f0] sm:$0xff]  ;;  %v2045_v0 = vld [vmem:[%s4514_s4 + $0x300] sm:$0xff] }
 0x20a   :  { %v2977_v39 = vpack.c.bf16 %v3794_v35, %v3792_v34  ;;  %v3033_v11 = vpack.c.bf16 %v2020_v5, %v2019_v2  ;;  %v3037_v15 = vpack.c.bf16 %v2022_v14, %v2021_v12  ;;  %v3041_v20 = vpack.c.bf16 %v2024_v17, %v2023_v16  ;;  %v2047_v54 = vld [vmem:[%s4514_s4 + $0x310] sm:$0xff]  ;;  %v2069_v12 = vld [vmem:[%s4514_s4 + $0x3c0] sm:$0xff]  ;;  %v2070_v14 = vld [vmem:[%s4514_s4 + $0x3c8] sm:$0xff] }
 0x20b   :  { %v2981_v51 = vpack.c.bf16 %v3798_v37, %v3796_v36  ;;  %v2985_v57 = vpack.c.bf16 %v3806_v53, %v3804_v52  ;;  %v2989_v60 = vpack.c.bf16 %v3812_v59, %v3810_v7  ;;  %v3045_v24 = vpack.c.bf16 %v2026_v6, %v2025_v22  ;;  %v2051_v5 = vld [vmem:[%s4514_s4 + $0x330] sm:$0xff]  ;;  %v2053_v17 = vld [vmem:[%s4514_s4 + $0x340] sm:$0xff]  ;;  %v2072_v6 = vld [vmem:[%s4514_s4 + $0x3d8] sm:$0xff] }
 0x20c   :  { %2978 = vmatprep.subr.bf16.mxu0 %v2977_v39  ;;  %v3049_v25 = vpack.c.bf16 %v2028_v27, %v2027_v26  ;;  %v3053_v8 = vpack.c.bf16 %v2030_v56, %v2029_v38  ;;  %v3085_v2 = vpack.c.bf16 %v2068_v62, %v2067_v19  ;;  %v3089_v16 = vpack.c.bf16 %v2070_v14, %v2069_v12  ;;  %v2071_v22 = vld [vmem:[%s4514_s4 + $0x3d0] sm:$0xff] }
 0x20d   :  { %2980 = vmatpush3.bf16.msra.mxu0 %v2977_v39  ;;  %v2046_v39 = vld [vmem:[%s4514_s4 + $0x308] sm:$0xff]  ;;  %v3093_v26 = vpack.c.bf16 %v2072_v6, %v2071_v22  ;;  %v2055_v27 = vld [vmem:[%s4514_s4 + $0x350] sm:$0xff] }
 0x20e   :  { %2982 = vmatprep.subr.bf16.mxu0 %v2981_v51 }
 0x211   :  { %2984 = vmatpush3.bf16.msra.mxu0 %v2981_v51  ;;  %v2064_v51 = vld [vmem:[%s4514_s4 + $0x398] sm:$0xff] }
 0x212   :  { %2986 = vmatprep.subr.bf16.mxu0 %v2985_v57 }
 0x215   :  { %2988 = vmatpush3.bf16.msra.mxu0 %v2985_v57  ;;  %v2048_v57 = vld [vmem:[%s4514_s4 + $0x318] sm:$0xff] }
 0x216   :  { %2990 = vmatprep.subr.bf16.mxu0 %v2989_v60  ;;  %v3079_v61 = vpack.c.bf16 %v2048_v57, %v2047_v54 }
 0x219   :  { %2992 = vmatpush3.bf16.msra.mxu0 %v2989_v60  ;;  %v2049_v60 = vld [vmem:[%s4514_s4 + $0x320] sm:$0xff] }
 0x21a   :  { %3026 = vmatprep.subr.bf16.mxu0 %v3025_v18 }
 0x21c   :  { %2611 = vmatmul.mubr.msk.f32.vlgmr.msra.gmra.mrb[16].mxu0 %vm75_vm0, %v3453_v43 }
 0x21d   :  { %2613 = vmatprep.mubr.msk.f32.mxu0 %vm75_vm0, %v3461_v46  ;;  %3028 = vmatpush3.bf16.msra.mxu0 %v3025_v18  ;;  %v2050_v18 = vld [vmem:[%s4514_s4 + $0x328] sm:$0xff] }
 0x21e   :  { %3030 = vmatprep.subr.bf16.mxu0 %v3029_v63 }
 0x220   :  { %2614 = vmatmul.mubr.msk.f32.gmra.mrb[18].mxu0 %vm75_vm0, %v3480_v55 }
 0x221   :  { %2616 = vmatprep.mubr.msk.f32.mxu0 %vm75_vm0, %v3490_v58  ;;  %3032 = vmatpush3.bf16.msra.mxu0 %v3029_v63  ;;  %v3083_v63 = vpack.c.bf16 %v2050_v18, %v2049_v60 }
 0x222   :  { %3034 = vmatprep.subr.bf16.mxu0 %v3033_v11 }
 0x224   :  { %2617 = vmatmul.mubr.msk.f32.gmra.mrb[20].mxu0 %vm75_vm0, %v3509_v10 }
 0x225   :  { %2619 = vmatprep.mubr.msk.f32.mxu0 %vm75_vm0, %v3519_v13  ;;  %3036 = vmatpush3.bf16.msra.mxu0 %v3033_v11  ;;  %v2052_v11 = vld [vmem:[%s4514_s4 + $0x338] sm:$0xff] }
 0x226   :  { %3038 = vmatprep.subr.bf16.mxu0 %v3037_v15 }
 0x228   :  { %2620 = vmatmul.mubr.msk.f32.gmra.mrb[22].mxu0 %vm75_vm0, %v3535_v23 }
 0x229   :  { %3040 = vmatpush3.bf16.msra.mxu0 %v3037_v15  ;;  %2654 = vmatprep.mubr.f32.mxu0 %v3574_v41  ;;  %v1997_v41 = vld [vmem:[%s4514_s4 + $0x1f0] sm:$0xff]  ;;  %v3087_v15 = vpack.c.bf16 %v2052_v11, %v2051_v5 }
 0x22a   :  { %3042 = vmatprep.subr.bf16.mxu0 %v3041_v20  ;;  %v3023_v29 = vpack.c.bf16 %v1998_v28, %v1997_v41  ;;  %v2073_v41 = vld [vmem:[%s4514_s4 + $0x3e0] sm:$0xff]  ;;  %v2074_v28 = vld [vmem:[%s4514_s4 + $0x3e8] sm:$0xff] }
 0x22b   :  { %v3097_v56 = vpack.c.bf16 %v2074_v28, %v2073_v41 }
 0x22c   :  { %3024 = vmatpush3.bf16.msra.mxu1 %v3023_v29 }
 0x22d   :  { %3044 = vmatpush3.bf16.msra.mxu0 %v3041_v20  ;;  %v2054_v20 = vld [vmem:[%s4514_s4 + $0x348] sm:$0xff] }
 0x22e   :  { %3046 = vmatprep.subr.bf16.mxu0 %v3045_v24 }
 0x231   :  { %3048 = vmatpush3.bf16.msra.mxu0 %v3045_v24  ;;  %v3091_v24 = vpack.c.bf16 %v2054_v20, %v2053_v17 }
 0x232   :  { %3050 = vmatprep.subr.bf16.mxu0 %v3049_v25 }
 0x235   :  { %3052 = vmatpush3.bf16.msra.mxu0 %v3049_v25  ;;  %v2056_v25 = vld [vmem:[%s4514_s4 + $0x358] sm:$0xff] }
 0x236   :  { %3054 = vmatprep.subr.bf16.mxu0 %v3053_v8  ;;  %v3095_v29 = vpack.c.bf16 %v2056_v25, %v2055_v27 }
 0x239   :  { %3056 = vmatpush3.bf16.msra.mxu0 %v3053_v8  ;;  %v2057_v8 = vld [vmem:[%s4514_s4 + $0x360] sm:$0xff] }
 0x23c   :  { %2655 = vmatmul.mubr.f32.vlgmr.msra.gmra.mrb[24].mxu0 %v3580_v42 }
 0x23d   :  { %2657 = vmatprep.mubr.f32.mxu0 %v3586_v44 }
 0x240   :  { %2658 = vmatmul.mubr.f32.gmra.mrb[26].mxu0 %v3592_v45 }
 0x241   :  { %2660 = vmatprep.mubr.f32.mxu0 %v3598_v47 }
 0x244   :  { %2661 = vmatmul.mubr.f32.gmra.mrb[28].mxu0 %v3604_v48 }
 0x245   :  { %2663 = vmatprep.mubr.f32.mxu0 %v3610_v49 }
 0x248   :  { %2664 = vmatmul.mubr.f32.gmra.mrb[30].mxu0 %v3616_v50 }
 0x2ef   :  { %v2612_v30 = vpop.f32.mrb[16].mxu0 }
 0x2f0   :  { %v630_v21 = vpop.f32.mrb[17].mxu0 }
 0x2f1   :  { %790 = vmatprep.mubr.f32.mxu1 %v630_v21 }
 0x2f2   :  { %791 = vmatmul.mubr.f32.vlgmr.msra.gmra.mrb[16].mxu1 %v3792_v34 }
 0x2f3   :  { %795 = vmatprep.mubr.f32.mxu1 %v2612_v30  ;;  %v2615_v31 = vpop.f32.mrb[18].mxu0  ;;  %v2058_v30 = vld [vmem:[%s4514_s4 + $0x368] sm:$0xff] }
 0x2f4   :  { %v640_v42 = vpop.f32.mrb[19].mxu0 }
 0x2f6   :  { %796 = vmatmul.mubr.f32.gmra.mrb[18].mxu1 %v3794_v35 }
 0x2f7   :  { %800 = vmatprep.mubr.f32.mxu1 %v640_v42  ;;  %v2618_v44 = vpop.f32.mrb[20].mxu0  ;;  %v2075_v42 = vld [vmem:[%s4514_s4 + $0x3f0] sm:$0xff] }
 0x2f8   :  { %v650_v45 = vpop.f32.mrb[21].mxu0 }
 0x2fa   :  { %801 = vmatmul.mubr.f32.gmra.mrb[20].mxu1 %v3796_v36  ;;  %v2062_v36 = vld [vmem:[%s4514_s4 + $0x388] sm:$0xff] }
 0x2fb   :  { %805 = vmatprep.mubr.f32.mxu1 %v2615_v31  ;;  %v2621_v47 = vpop.f32.mrb[22].mxu0  ;;  %v4005_v31 = vld [vmem:[%s4516_s5 + $0x1] ss:$0 sm:$0xff] }
 0x2fc   :  { %v660_v48 = vpop.f32.mrb[23].mxu0 }
 0x2fe   :  { %806 = vmatmul.mubr.f32.gmra.mrb[22].mxu1 %v3798_v37 }
 0x2ff   :  { %810 = vmatprep.mubr.f32.mxu1 %v650_v45 }
 0x302   :  { %811 = vmatmul.mubr.f32.gmra.mrb[24].mxu1 %v3804_v52  ;;  %v3075_v52 = vpack.c.bf16 %v2046_v39, %v2045_v0 }
 0x303   :  { %815 = vmatprep.mubr.f32.mxu1 %v2618_v44  ;;  %v2076_v44 = vld [vmem:[%s4514_s4 + $0x3f8] sm:$0xff] }
 0x306   :  { %816 = vmatmul.mubr.f32.gmra.mrb[26].mxu1 %v3806_v53  ;;  %v3077_v53 = vpack.c.bf16 %v2064_v51, %v2063_v40 }
 0x307   :  { %820 = vmatprep.mubr.f32.mxu1 %v660_v48 }
 0x30a   :  { %821 = vmatmul.mubr.f32.gmra.mrb[28].mxu1 %v3810_v7  ;;  %v2065_v7 = vld [vmem:[%s4514_s4 + $0x3a0] sm:$0xff] }
 0x30b   :  { %825 = vmatprep.mubr.f32.mxu1 %v2621_v47  ;;  %v3099_v47 = vpack.c.bf16 %v2058_v30, %v2057_v8 }
 0x30e   :  { %826 = vmatmul.mubr.f32.gmra.mrb[30].mxu1 %v3812_v59  ;;  %v2066_v59 = vld [vmem:[%s4514_s4 + $0x3a8] sm:$0xff] }
 0x30f   :  { %2682 = vmatprep.mubr.msk.f32.mxu1 %vm75_vm0, %v3372_v9  ;;  %v3902_v49 = vpop.f32.mrb[24].mxu0  ;;  %v2061_v9 = vld [vmem:[%s4514_s4 + $0x380] sm:$0xff]  ;;  %v3081_v3 = vpack.c.bf16 %v2066_v59, %v2065_v7 }
 0x310   :  { %v3904_v50 = vpop.f32.mrb[25].mxu0  ;;  %v3073_v37 = vpack.c.bf16 %v2062_v36, %v2061_v9  ;;  %v3101_v36 = vpack.c.bf16 %v2076_v44, %v2075_v42 }
 0x312   :  { %3074 = vmatprep.subr.bf16.mxu0 %v3073_v37 }
 0x313   :  { %v3906_v32 = vpop.f32.mrb[26].mxu0  ;;  %3076 = vmatpush3.bf16.msra.mxu0 %v3075_v52 }
 0x314   :  { %v3908_v4 = vpop.f32.mrb[27].mxu0  ;;  %3078 = vmatprep.subr.bf16.mxu0 %v3077_v53 }
 0x317   :  { %v3910_v1 = vpop.f32.mrb[28].mxu0  ;;  %3080 = vmatpush3.bf16.msra.mxu0 %v3079_v61 }
 0x318   :  { %v3912_v33 = vpop.f32.mrb[29].mxu0  ;;  %3082 = vmatprep.subr.bf16.mxu0 %v3081_v3 }
 0x31b   :  { %v3914_v34 = vpop.f32.mrb[30].mxu0  ;;  %3084 = vmatpush3.bf16.msra.mxu0 %v3083_v63 }
 0x31c   :  { %v3916_v35 = vpop.f32.mrb[31].mxu0  ;;  %3086 = vmatprep.subr.bf16.mxu0 %v3085_v2 }
 0x31f   :  { %3088 = vmatpush3.bf16.msra.mxu0 %v3087_v15 }
 0x320   :  { %3090 = vmatprep.subr.bf16.mxu0 %v3089_v16 }
 0x323   :  { %3092 = vmatpush3.bf16.msra.mxu0 %v3091_v24 }
 0x324   :  { %3094 = vmatprep.subr.bf16.mxu0 %v3093_v26 }
 0x327   :  { %3096 = vmatpush3.bf16.msra.mxu0 %v3095_v29 }
 0x328   :  { %3098 = vmatprep.subr.bf16.mxu0 %v3097_v56 }
 0x32b   :  { %3100 = vmatpush3.bf16.msra.mxu0 %v3099_v47 }
 0x32c   :  { %3102 = vmatprep.subr.bf16.mxu0 %v3101_v36 }
 0x3c5   :  { %v2301_v38 = vpop.f32.mrb[16].mxu1 }
 0x3c6   :  { %v2302_v21 = vpop.f32.mrb[17].mxu1 }
 0x3c7   :  { %v2303_v45 = vadd.f32 %v2302_v21, %v2301_v38 }
 0x3c9   :  { %v2304_v48 = vpop.f32.mrb[18].mxu1  ;;  %v793_v9 = vadd.f32 %v2303_v45, %v4005_v31 }
 0x3ca   :  { %v2305_v0 = vpop.f32.mrb[19].mxu1 }
 0x3cb   :  { %v2306_v37 = vadd.f32 %v2305_v0, %v2304_v48  ;;  %v898_v39 = vadd.f32 %v3904_v50, %v793_v9 }
 0x3cd   :  { %v798_v40 = vadd.f32 %v2306_v37, %v4005_v31  ;;  %v2307_v51 = vpop.f32.mrb[20].mxu1  ;;  %v4016_v52 = vmax.f32 %v898_v39, 0.0 }
 0x3ce   :  { %v2308_v53 = vpop.f32.mrb[21].mxu1 }
 0x3cf   :  { %v903_v54 = vadd.f32 %v3902_v49, %v798_v40  ;;  %v2309_v57 = vadd.f32 %v2308_v53, %v2307_v51  ;;  %v958_v3 = vmul.f32 %v4016_v52, %v4016_v52 }
 0x3d1   :  { %v4019_v7 = vmax.f32 %v903_v54, 0.0  ;;  %v2310_v59 = vpop.f32.mrb[22].mxu1  ;;  %v803_v61 = vadd.f32 %v2309_v57, %v4005_v31 }
 0x3d2   :  { %v2311_v50 = vpop.f32.mrb[23].mxu1 }
 0x3d3   :  { %v944_v60 = vadd.f32 %v4019_v7, %v4016_v52  ;;  %v959_v18 = vmul.f32 %v4019_v7, %v4019_v7  ;;  %v2312_v19 = vadd.f32 %v2311_v50, %v2310_v59  ;;  %v908_v62 = vadd.f32 %v3908_v4, %v803_v61 }
 0x3d5   :  { %v966_v49 = vadd.f32 %v959_v18, %v958_v3  ;;  %v808_v63 = vadd.f32 %v2312_v19, %v4005_v31  ;;  %v4030_v2 = vmax.f32 %v908_v62, 0.0  ;;  %v2313_v5 = vpop.f32.mrb[24].mxu1 }
 0x3d6   :  { %v2314_v11 = vpop.f32.mrb[25].mxu1 }
 0x3d7   :  { %v913_v12 = vadd.f32 %v3906_v32, %v808_v63  ;;  %v945_v14 = vadd.f32 %v944_v60, %v4030_v2  ;;  %v960_v15 = vmul.f32 %v4030_v2, %v4030_v2  ;;  %v2315_v16 = vadd.f32 %v2314_v11, %v2313_v5 }
 0x3d9   :  { %v4036_v17 = vmax.f32 %v913_v12, 0.0  ;;  %v967_v20 = vadd.f32 %v966_v49, %v960_v15  ;;  %v2316_v22 = vpop.f32.mrb[26].mxu1  ;;  %v813_v4 = vadd.f32 %v2315_v16, %v4005_v31 }
 0x3da   :  { %v2317_v6 = vpop.f32.mrb[27].mxu1 }
 0x3db   :  { %v961_v24 = vmul.f32 %v4036_v17, %v4036_v17  ;;  %v2318_v26 = vadd.f32 %v2317_v6, %v2316_v22  ;;  %v918_v27 = vadd.f32 %v3912_v33, %v813_v4  ;;  %v946_v32 = vadd.f32 %v945_v14, %v4036_v17 }
 0x3dd   :  { %v818_v25 = vadd.f32 %v2318_v26, %v4005_v31  ;;  %v4044_v41 = vmax.f32 %v918_v27, 0.0  ;;  %v968_v28 = vadd.f32 %v967_v20, %v961_v24  ;;  %v2319_v29 = vpop.f32.mrb[28].mxu1 }
 0x3de   :  { %v2320_v38 = vpop.f32.mrb[29].mxu1 }
 0x3df   :  { %v923_v56 = vadd.f32 %v3910_v1, %v818_v25  ;;  %v947_v8 = vadd.f32 %v946_v32, %v4044_v41  ;;  %v962_v30 = vmul.f32 %v4044_v41, %v4044_v41  ;;  %v2321_v21 = vadd.f32 %v2320_v38, %v2319_v29  ;;  %v2034_v29 = vld [vmem:[%s4517_s6 + $0x1] ss:$0 sm:$0xff] }
 0x3e1   :  { %v941_v42 = vmax.f32 %v923_v56, 0.0  ;;  %v969_v44 = vadd.f32 %v968_v28, %v962_v30  ;;  %v2322_v33 = vpop.f32.mrb[30].mxu1  ;;  %v823_v45 = vadd.f32 %v2321_v21, %v4005_v31 }
 0x3e2   :  { %v2323_v47 = vpop.f32.mrb[31].mxu1 }
 0x3e3   :  { %v963_v48 = vmul.f32 %v941_v42, %v941_v42  ;;  %v2324_v9 = vadd.f32 %v2323_v47, %v2322_v33  ;;  %v928_v36 = vadd.f32 %v3916_v35, %v823_v45  ;;  %v948_v0 = vadd.f32 %v947_v8, %v941_v42 }
 0x3e5   :  { %v828_v37 = vadd.f32 %v2324_v9, %v4005_v31  ;;  %v942_v1 = vmax.f32 %v928_v36, 0.0  ;;  %v970_v39 = vadd.f32 %v969_v44, %v963_v48 }
 0x3e7   :  { %v933_v40 = vadd.f32 %v3914_v34, %v828_v37  ;;  %v949_v51 = vadd.f32 %v948_v0, %v942_v1  ;;  %v964_v53 = vmul.f32 %v942_v1, %v942_v1 }
 0x3e9   :  { %v943_v54 = vmax.f32 %v933_v40, 0.0  ;;  %v971_v57 = vadd.f32 %v970_v39, %v964_v53 }
 0x3eb   :  { %v965_v59 = vmul.f32 %v943_v54, %v943_v54  ;;  %v950_v61 = vadd.f32 %v949_v51, %v943_v54 }
 0x3ed   :  { %v951_v3 = vrot.slane %v950_v61, 4  ;;  %v972_v50 = vadd.f32 %v971_v57, %v965_v59 }
 0x3ef   :  { %v952_v60 = vadd.f32 %v951_v3, %v950_v61  ;;  %v973_v18 = vrot.slane %v972_v50, 4  ;;  %v2077_v61 = vld [vmem:[%s4514_s4 + $0x400] sm:$0xff]  ;;  %v2078_v3 = vld [vmem:[%s4514_s4 + $0x408] sm:$0xff] }
 0x3f1   :  { %v953_v19 = vrot.slane %v952_v60, 2  ;;  %v974_v62 = vadd.f32 %v973_v18, %v972_v50  ;;  %v2079_v18 = vld [vmem:[%s4514_s4 + $0x410] sm:$0xff] }
 0x3f3   :  { %v954_v35 = vadd.f32 %v953_v19, %v952_v60  ;;  %v975_v49 = vrot.slane %v974_v62, 2  ;;  %v3105_v60 = vpack.c.bf16 %v2078_v3, %v2077_v61  ;;  %v2080_v19 = vld [vmem:[%s4514_s4 + $0x418] sm:$0xff] }
 0x3f4   :  { %v1583_v61 = vld [vmem:[%s4519_s8 + $0x38] sm:$0xff] }
 0x3f5   :  { %v955_v63 = vrot.slane %v954_v35, 1  ;;  %v976_v31 = vadd.f32 %v975_v49, %v974_v62  ;;  %v3109_v62 = vpack.c.bf16 %v2080_v19, %v2079_v18  ;;  %v2082_v49 = vld [vmem:[%s4514_s4 + $0x428] sm:$0xff]  ;;  %v1586_v19 = vld [vmem:[%s4519_s8 + $0x50] sm:$0xff] }
 0x3f7   :  { %v956_v5 = vadd.f32 %v955_v63, %v954_v35  ;;  %v977_v11 = vrot.slane %v976_v31, 1  ;;  %v2081_v35 = vld [vmem:[%s4514_s4 + $0x420] sm:$0xff] }
 0x3f8   :  { %v3113_v63 = vpack.c.bf16 %v2082_v49, %v2081_v35  ;;  %v1588_v49 = vld [vmem:[%s4519_s8 + $0x60] sm:$0xff] }
 0x3f9   :  { %v957_v12 = vmul.f32 0.015625, %v956_v5  ;;  %v978_v34 = vadd.f32 %v977_v11, %v976_v31  ;;  %v2083_v31 = vld [vmem:[%s4514_s4 + $0x430] sm:$0xff]  ;;  %v2084_v5 = vld [vmem:[%s4514_s4 + $0x438] sm:$0xff]  ;;  %v2086_v11 = vld [vmem:[%s4514_s4 + $0x448] sm:$0xff] }
 0x3fb   :  { %v979_v14 = vmul.f32 0.015625, %v978_v34  ;;  %v980_v15 = vmul.f32 %v957_v12, %v957_v12  ;;  %v988_v16 = vsub.f32 %v942_v1, %v957_v12  ;;  %v982_v20 = vsub.f32 %v4016_v52, %v957_v12  ;;  %v2089_v34 = vld [vmem:[%s4514_s4 + $0x460] sm:$0xff] }
 0x3fc   :  { %v983_v22 = vsub.f32 %v4019_v7, %v957_v12  ;;  %v984_v4 = vsub.f32 %v4030_v2, %v957_v12  ;;  %v985_v6 = vsub.f32 %v4036_v17, %v957_v12  ;;  %v986_v24 = vsub.f32 %v4044_v41, %v957_v12  ;;  %v2036_v2 = vld [vmem:[%s4518_s7 + $0x1] ss:$0 sm:$0xff] }
 0x3fd   :  { %v981_v26 = vsub.f32 %v979_v14, %v980_v15  ;;  %v987_v27 = vsub.f32 %v941_v42, %v957_v12  ;;  %v989_v32 = vsub.f32 %v943_v54, %v957_v12  ;;  %v2088_v12 = vld [vmem:[%s4514_s4 + $0x458] sm:$0xff]  ;;  %v2090_v14 = vld [vmem:[%s4514_s4 + $0x468] sm:$0xff] }
 0x3fe   :  { %v3129_v15 = vpack.c.bf16 %v2090_v14, %v2089_v34 }
 0x3ff   :  { %v990_v25 = vadd.f32 1e-05, %v981_v26  ;;  %v3256_v26 = vld [vmem:[%s4515_s2 + $0x10] sm:$0xff] }
 0x401   :  { %3250 = vrsqrt.f32 %v990_v25  ;;  %v3259_v25 = vld [vmem:[%s4515_s2 + $0x28] sm:$0xff] }
 0x40b   :  { %v3251_v28 = vpop.eup %3250 }
 0x40c   :  { %v998_v38 = vmul.f32 %v3251_v28, %v988_v16  ;;  %v992_v52 = vmul.f32 %v3251_v28, %v982_v20  ;;  %v993_v56 = vmul.f32 %v3251_v28, %v983_v22  ;;  %v994_v7 = vmul.f32 %v3251_v28, %v984_v4  ;;  %v2060_v16 = vld [vmem:[%s4514_s4 + $0x378] sm:$0xff]  ;;  %v2091_v22 = vld [vmem:[%s4514_s4 + $0x470] sm:$0xff] }
 0x40d   :  { %v995_v17 = vmul.f32 %v3251_v28, %v985_v6  ;;  %v996_v41 = vmul.f32 %v3251_v28, %v986_v24  ;;  %v997_v8 = vmul.f32 %v3251_v28, %v987_v27  ;;  %v999_v30 = vmul.f32 %v3251_v28, %v989_v32  ;;  %v2092_v4 = vld [vmem:[%s4514_s4 + $0x478] sm:$0xff]  ;;  %v3255_v24 = vld [vmem:[%s4515_s2 + $0x8] sm:$0xff]  ;;  %v3258_v32 = vld [vmem:[%s4515_s2 + $0x20] sm:$0xff] }
 0x40e   :  { %v1008_v21 = vmul.f32 %v2034_v29, %v992_v52  ;;  %v1009_v42 = vmul.f32 %v2034_v29, %v993_v56  ;;  %v1010_v44 = vmul.f32 %v2034_v29, %v994_v7  ;;  %v1014_v1 = vmul.f32 %v2034_v29, %v998_v38  ;;  %v3257_v27 = vld [vmem:[%s4515_s2 + $0x18] sm:$0xff]  ;;  %v3260_v28 = vld [vmem:[%s4515_s2 + $0x30] sm:$0xff] }
 0x40f   :  { %v1011_v33 = vmul.f32 %v2034_v29, %v995_v17  ;;  %v1012_v45 = vmul.f32 %v2034_v29, %v996_v41  ;;  %v1013_v36 = vmul.f32 %v2034_v29, %v997_v8  ;;  %v1015_v53 = vmul.f32 %v2034_v29, %v999_v30  ;;  %v3261_v29 = vld [vmem:[%s4515_s2 + $0x38] sm:$0xff] }
 0x410   :  { %v4065_v47 = vadd.f32 %v2036_v2, %v1008_v21  ;;  %v4067_v48 = vadd.f32 %v2036_v2, %v1009_v42  ;;  %v4069_v9 = vadd.f32 %v2036_v2, %v1010_v44  ;;  %v4083_v57 = vadd.f32 %v2036_v2, %v1014_v1  ;;  %v1578_v1 = vld [vmem:[%s4519_s8 + $0x10] sm:$0xff] }
 0x411   :  { %v4071_v0 = vadd.f32 %v2036_v2, %v1011_v33  ;;  %v4077_v40 = vadd.f32 %v2036_v2, %v1012_v45  ;;  %v4079_v51 = vadd.f32 %v2036_v2, %v1013_v36  ;;  %v4085_v59 = vadd.f32 %v2036_v2, %v1015_v53  ;;  %v1580_v53 = vld [vmem:[%s4519_s8 + $0x20] sm:$0xff] }
 0x412   :  { %v3057_v37 = vpack.c.bf16 %v4067_v48, %v4065_v47  ;;  %v3133_v6 = vpack.c.bf16 %v2092_v4, %v2091_v22  ;;  %v3264_v36 = vmov 0.0  }
 0x413   :  { %v3061_v39 = vpack.c.bf16 %v4071_v0, %v4069_v9  ;;  %v3065_v54 = vpack.c.bf16 %v4079_v51, %v4077_v40  ;;  %v3069_v50 = vpack.c.bf16 %v4085_v59, %v4083_v57 }
 0x414   :  { %3058 = vmatprep.subr.bf16.mxu1 %v3057_v37 }
 0x415   :  { %3060 = vmatpush3.bf16.msra.mxu1 %v3057_v37  ;;  %v1577_v37 = vld [vmem:[%s4519_s8 + $0x8] sm:$0xff] }
 0x416   :  { %3062 = vmatprep.subr.bf16.mxu1 %v3061_v39 }
 0x419   :  { %3064 = vmatpush3.bf16.msra.mxu1 %v3061_v39 }
 0x41a   :  { %3066 = vmatprep.subr.bf16.mxu1 %v3065_v54 }
 0x41d   :  { %3068 = vmatpush3.bf16.msra.mxu1 %v3065_v54  ;;  %v1581_v54 = vld [vmem:[%s4519_s8 + $0x28] sm:$0xff] }
 0x41e   :  { %3070 = vmatprep.subr.bf16.mxu1 %v3069_v50 }
 0x421   :  { %3072 = vmatpush3.bf16.msra.mxu1 %v3069_v50  ;;  %v1584_v50 = vld [vmem:[%s4519_s8 + $0x40] sm:$0xff] }
 0x422   :  { %3106 = vmatprep.subr.bf16.mxu1 %v3105_v60 }
 0x424   :  { %2683 = vmatmul.mubr.msk.f32.vlgmr.msra.gmra.mrb[32].mxu1 %vm75_vm0, %v3453_v43  ;;  %v3117_v43 = vpack.c.bf16 %v2084_v5, %v2083_v31  ;;  %v1590_v5 = vld [vmem:[%s4519_s8 + $0x70] sm:$0xff] }
 0x425   :  { %2685 = vmatprep.mubr.msk.f32.mxu1 %vm75_vm0, %v3461_v46  ;;  %3108 = vmatpush3.bf16.msra.mxu1 %v3105_v60  ;;  %v2085_v46 = vld [vmem:[%s4514_s4 + $0x440] sm:$0xff]  ;;  %v1585_v60 = vld [vmem:[%s4519_s8 + $0x48] sm:$0xff] }
 0x426   :  { %3110 = vmatprep.subr.bf16.mxu1 %v3109_v62  ;;  %v3162_v18 = vpack.c.bf16 %v1585_v60, %v1584_v50 }
 0x428   :  { %2686 = vmatmul.mubr.msk.f32.gmra.mrb[34].mxu1 %vm75_vm0, %v3480_v55  ;;  %v3121_v55 = vpack.c.bf16 %v2086_v11, %v2085_v46 }
 0x429   :  { %2688 = vmatprep.mubr.msk.f32.mxu1 %vm75_vm0, %v3490_v58  ;;  %3112 = vmatpush3.bf16.msra.mxu1 %v3109_v62  ;;  %v2087_v58 = vld [vmem:[%s4514_s4 + $0x450] sm:$0xff]  ;;  %v1587_v62 = vld [vmem:[%s4519_s8 + $0x58] sm:$0xff] }
 0x42a   :  { %3114 = vmatprep.subr.bf16.mxu1 %v3113_v63  ;;  %v3165_v35 = vpack.c.bf16 %v1587_v62, %v1586_v19 }
 0x42c   :  { %2689 = vmatmul.mubr.msk.f32.gmra.mrb[36].mxu1 %vm75_vm0, %v3509_v10  ;;  %v3254_v10 = vld [vmem:[%s4515_s2] sm:$0xff] }
 0x42d   :  { %2691 = vmatprep.mubr.msk.f32.mxu1 %vm75_vm0, %v3519_v13  ;;  %3116 = vmatpush3.bf16.msra.mxu1 %v3113_v63  ;;  %v3125_v13 = vpack.c.bf16 %v2088_v12, %v2087_v58  ;;  %v1589_v63 = vld [vmem:[%s4519_s8 + $0x68] sm:$0xff]  ;;  %v2094_v58 = vld [vmem:[%s4516_s5 + $0x2] ss:$0 sm:$0xff] }
 0x42e   :  { %3118 = vmatprep.subr.bf16.mxu1 %v3117_v43  ;;  %v3168_v31 = vpack.c.bf16 %v1589_v63, %v1588_v49 }
 0x430   :  { %2692 = vmatmul.mubr.msk.f32.gmra.mrb[38].mxu1 %vm75_vm0, %v3535_v23  ;;  %v2059_v23 = vld [vmem:[%s4514_s4 + $0x370] sm:$0xff] }
 0x431   :  { %3120 = vmatpush3.bf16.msra.mxu1 %v3117_v43  ;;  %2726 = vmatprep.mubr.f32.mxu1 %v3254_v10  ;;  %v3103_v20 = vpack.c.bf16 %v2060_v16, %v2059_v23  ;;  %v1591_v43 = vld [vmem:[%s4519_s8 + $0x78] sm:$0xff] }
 0x432   :  { %3122 = vmatprep.subr.bf16.mxu1 %v3121_v55  ;;  %v3171_v46 = vpack.c.bf16 %v1591_v43, %v1590_v5 }
 0x433   :  { %3104 = vmatpush3.bf16.msra.mxu0 %v3103_v20 }
 0x435   :  { %3124 = vmatpush3.bf16.msra.mxu1 %v3121_v55 }
 0x436   :  { %3126 = vmatprep.subr.bf16.mxu1 %v3125_v13 }
 0x439   :  { %3128 = vmatpush3.bf16.msra.mxu1 %v3125_v13 }
 0x43a   :  { %3130 = vmatprep.subr.bf16.mxu1 %v3129_v15 }
 0x43d   :  { %3132 = vmatpush3.bf16.msra.mxu1 %v3129_v15 }
 0x43e   :  { %3134 = vmatprep.subr.bf16.mxu1 %v3133_v6 }
 0x441   :  { %3136 = vmatpush3.bf16.msra.mxu1 %v3133_v6 }
 0x444   :  { %2727 = vmatmul.mubr.f32.vlgmr.msra.gmra.mrb[40].mxu1 %v3255_v24 }
 0x445   :  { %2729 = vmatprep.mubr.f32.mxu1 %v3256_v26 }
 0x448   :  { %2730 = vmatmul.mubr.f32.gmra.mrb[42].mxu1 %v3257_v27 }
 0x449   :  { %2732 = vmatprep.mubr.f32.mxu1 %v3258_v32 }
 0x44c   :  { %2733 = vmatmul.mubr.f32.gmra.mrb[44].mxu1 %v3259_v25 }
 0x44d   :  { %2735 = vmatprep.mubr.f32.mxu1 %v3260_v28 }
 0x450   :  { %2736 = vmatmul.mubr.f32.gmra.mrb[46].mxu1 %v3261_v29 }
 0x451   :  { %2754 = vmatprep.mubr.msk.f32.mxu1 %vm3263_vm1, %v3264_v36 }
 0x4f7   :  { %v2684_v38 = vpop.f32.mrb[32].mxu1 }
 0x4f8   :  { %v1098_v52 = vpop.f32.mrb[33].mxu1 }
 0x4f9   :  { %1258 = vmatprep.mubr.f32.mxu0 %v1098_v52 }
 0x4fa   :  { %1259 = vmatmul.mubr.f32.vlgmr.msra.gmra.mrb[32].mxu0 %v4065_v47 }
 0x4fb   :  { %1263 = vmatprep.mubr.f32.mxu0 %v2684_v38  ;;  %v2687_v56 = vpop.f32.mrb[34].mxu1 }
 0x4fc   :  { %v1108_v7 = vpop.f32.mrb[35].mxu1 }
 0x4fe   :  { %1264 = vmatmul.mubr.f32.gmra.mrb[34].mxu0 %v4067_v48 }
 0x4ff   :  { %1268 = vmatprep.mubr.f32.mxu0 %v1108_v7  ;;  %v2690_v2 = vpop.f32.mrb[36].mxu1 }
 0x500   :  { %v1118_v17 = vpop.f32.mrb[37].mxu1 }
 0x502   :  { %1269 = vmatmul.mubr.f32.gmra.mrb[36].mxu0 %v4069_v9  ;;  %v3262_v9 = vmov 0.0|0.0  }
 0x503   :  { %1273 = vmatprep.mubr.f32.mxu0 %v2687_v56  ;;  %v2693_v41 = vpop.f32.mrb[38].mxu1  ;;  %3137 = vmatprep.subr.bf16.mxu1 %v3262_v9 }
 0x504   :  { %v1128_v8 = vpop.f32.mrb[39].mxu1  ;;  %3149 = vmatprep.subr.bf16.mxu0 %v3262_v9 }
 0x506   :  { %1274 = vmatmul.mubr.f32.gmra.mrb[38].mxu0 %v4071_v0  ;;  %v1576_v0 = vld [vmem:[%s4519_s8] sm:$0xff] }
 0x507   :  { %1278 = vmatprep.mubr.f32.mxu0 %v1118_v17  ;;  %v3150_v39 = vpack.c.bf16 %v1577_v37, %v1576_v0 }
 0x509   :  { %3151 = vmatpush3.bf16.msra.mxu0 %v3150_v39 }
 0x50a   :  { %1279 = vmatmul.mubr.f32.gmra.mrb[40].mxu0 %v4077_v40  ;;  %v1579_v40 = vld [vmem:[%s4519_s8 + $0x18] sm:$0xff]  ;;  %3152 = vmatprep.subr.bf16.mxu0 %v3262_v9 }
 0x50b   :  { %1283 = vmatprep.mubr.f32.mxu0 %v2690_v2 }
 0x50e   :  { %1284 = vmatmul.mubr.f32.gmra.mrb[42].mxu0 %v4079_v51  ;;  %v3153_v51 = vpack.c.bf16 %v1579_v40, %v1578_v1 }
 0x50f   :  { %1288 = vmatprep.mubr.f32.mxu0 %v1128_v8 }
 0x510   :  { %3154 = vmatpush3.bf16.msra.mxu0 %v3153_v51 }
 0x511   :  { %3155 = vmatprep.subr.bf16.mxu0 %v3262_v9 }
 0x512   :  { %1289 = vmatmul.mubr.f32.gmra.mrb[44].mxu0 %v4083_v57  ;;  %v3156_v57 = vpack.c.bf16 %v1581_v54, %v1580_v53 }
 0x513   :  { %1293 = vmatprep.mubr.f32.mxu0 %v2693_v41 }
 0x514   :  { %3157 = vmatpush3.bf16.msra.mxu0 %v3156_v57 }
 0x515   :  { %3158 = vmatprep.subr.bf16.mxu0 %v3262_v9 }
 0x516   :  { %1294 = vmatmul.mubr.f32.gmra.mrb[46].mxu0 %v4085_v59  ;;  %v1582_v59 = vld [vmem:[%s4519_s8 + $0x30] sm:$0xff] }
 0x517   :  { %v4189_v30 = vpop.f32.mrb[40].mxu1  ;;  %2789 = vmatprep.mubr.msk.f32.mxu0 %vm3263_vm1, %v3264_v36  ;;  %v3159_v3 = vpack.c.bf16 %v1583_v61, %v1582_v59 }
 0x518   :  { %v4191_v21 = vpop.f32.mrb[41].mxu1 }
 0x519   :  { %3160 = vmatpush3.bf16.msra.mxu0 %v3159_v3 }
 0x51a   :  { %3161 = vmatprep.subr.bf16.mxu0 %v3262_v9 }
 0x51b   :  { %v4193_v42 = vpop.f32.mrb[42].mxu1 }
 0x51c   :  { %v4195_v44 = vpop.f32.mrb[43].mxu1 }
 0x51d   :  { %3163 = vmatpush3.bf16.msra.mxu0 %v3162_v18 }
 0x51e   :  { %3164 = vmatprep.subr.bf16.mxu0 %v3262_v9 }
 0x51f   :  { %v4197_v33 = vpop.f32.mrb[44].mxu1 }
 0x520   :  { %v4199_v45 = vpop.f32.mrb[45].mxu1 }
 0x521   :  { %3166 = vmatpush3.bf16.msra.mxu0 %v3165_v35 }
 0x522   :  { %3167 = vmatprep.subr.bf16.mxu0 %v3262_v9 }
 0x523   :  { %v4201_v47 = vpop.f32.mrb[46].mxu1 }
 0x524   :  { %v4203_v48 = vpop.f32.mrb[47].mxu1 }
 0x525   :  { %3169 = vmatpush3.bf16.msra.mxu0 %v3168_v31 }
 0x526   :  { %3170 = vmatprep.subr.bf16.mxu0 %v3262_v9 }
 0x529   :  { %3172 = vmatpush3.bf16.msra.mxu0 %v3171_v46 }
 0x52a   :  { %3197 = vmatprep.subr.bf16.mxu0 %v3262_v9 }
 0x5cd   :  { %v2397_v11 = vpop.f32.mrb[32].mxu0 }
 0x5ce   :  { %v2398_v55 = vpop.f32.mrb[33].mxu0 }
 0x5cf   :  { %v2399_v12 = vadd.f32 %v2398_v55, %v2397_v11 }
 0x5d1   :  { %v2400_v10 = vpop.f32.mrb[34].mxu0  ;;  %v1261_v13 = vadd.f32 %v2399_v12, %v2094_v58 }
 0x5d2   :  { %v2401_v34 = vpop.f32.mrb[35].mxu0 }
 0x5d3   :  { %v2402_v14 = vadd.f32 %v2401_v34, %v2400_v10  ;;  %v1366_v15 = vadd.f32 %v4191_v21, %v1261_v13 }
 0x5d5   :  { %v1266_v23 = vadd.f32 %v2402_v14, %v2094_v58  ;;  %v2403_v16 = vpop.f32.mrb[36].mxu0  ;;  %v4271_v20 = vmax.f32 %v1366_v15, 0.0 }
 0x5d6   :  { %v2404_v22 = vpop.f32.mrb[37].mxu0 }
 0x5d7   :  { %v1371_v4 = vadd.f32 %v4189_v30, %v1266_v23  ;;  %v2405_v6 = vadd.f32 %v2404_v22, %v2403_v16  ;;  %v1426_v32 = vmul.f32 %v4271_v20, %v4271_v20 }
 0x5d9   :  { %v4274_v24 = vmax.f32 %v1371_v4, 0.0  ;;  %v2406_v26 = vpop.f32.mrb[38].mxu0  ;;  %v1271_v27 = vadd.f32 %v2405_v6, %v2094_v58 }
 0x5da   :  { %v2407_v25 = vpop.f32.mrb[39].mxu0 }
 0x5db   :  { %v1412_v28 = vadd.f32 %v4274_v24, %v4271_v20  ;;  %v1427_v29 = vmul.f32 %v4274_v24, %v4274_v24  ;;  %v2408_v38 = vadd.f32 %v2407_v25, %v2406_v26  ;;  %v1376_v52 = vadd.f32 %v4195_v44, %v1271_v27 }
 0x5dd   :  { %v1434_v56 = vadd.f32 %v1427_v29, %v1426_v32  ;;  %v1276_v7 = vadd.f32 %v2408_v38, %v2094_v58  ;;  %v4283_v2 = vmax.f32 %v1376_v52, 0.0  ;;  %v2409_v17 = vpop.f32.mrb[40].mxu0 }
 0x5de   :  { %v2410_v41 = vpop.f32.mrb[41].mxu0 }
 0x5df   :  { %v1381_v8 = vadd.f32 %v4193_v42, %v1276_v7  ;;  %v1413_v30 = vadd.f32 %v1412_v28, %v4283_v2  ;;  %v1428_v21 = vmul.f32 %v4283_v2, %v4283_v2  ;;  %v2411_v0 = vadd.f32 %v2410_v41, %v2409_v17 }
 0x5e1   :  { %v4289_v37 = vmax.f32 %v1381_v8, 0.0  ;;  %v1435_v1 = vadd.f32 %v1434_v56, %v1428_v21  ;;  %v2412_v39 = vpop.f32.mrb[42].mxu0  ;;  %v1281_v40 = vadd.f32 %v2411_v0, %v2094_v58 }
 0x5e2   :  { %v2413_v44 = vpop.f32.mrb[43].mxu0 }
 0x5e3   :  { %v1429_v51 = vmul.f32 %v4289_v37, %v4289_v37  ;;  %v2414_v53 = vadd.f32 %v2413_v44, %v2412_v39  ;;  %v1386_v54 = vadd.f32 %v4199_v45, %v1281_v40  ;;  %v1414_v42 = vadd.f32 %v1413_v30, %v4289_v37 }
 0x5e5   :  { %v1286_v57 = vadd.f32 %v2414_v53, %v2094_v58  ;;  %v4295_v59 = vmax.f32 %v1386_v54, 0.0  ;;  %v1436_v61 = vadd.f32 %v1435_v1, %v1429_v51  ;;  %v2415_v3 = vpop.f32.mrb[44].mxu0  ;;  %v2096_v53 = vld [vmem:[%s4517_s6 + $0x2] ss:$0 sm:$0xff] }
 0x5e6   :  { %v2416_v50 = vpop.f32.mrb[45].mxu0 }
 0x5e7   :  { %v1391_v60 = vadd.f32 %v4197_v33, %v1286_v57  ;;  %v1415_v18 = vadd.f32 %v1414_v42, %v4295_v59  ;;  %v1430_v19 = vmul.f32 %v4295_v59, %v4295_v59  ;;  %v2417_v62 = vadd.f32 %v2416_v50, %v2415_v3 }
 0x5e9   :  { %v1409_v35 = vmax.f32 %v1391_v60, 0.0  ;;  %v1437_v49 = vadd.f32 %v1436_v61, %v1430_v19  ;;  %v2418_v63 = vpop.f32.mrb[46].mxu0  ;;  %v1291_v45 = vadd.f32 %v2417_v62, %v2094_v58 }
 0x5ea   :  { %v2419_v31 = vpop.f32.mrb[47].mxu0 }
 0x5eb   :  { %v1431_v5 = vmul.f32 %v1409_v35, %v1409_v35  ;;  %v2420_v43 = vadd.f32 %v2419_v31, %v2418_v63  ;;  %v1396_v46 = vadd.f32 %v4203_v48, %v1291_v45  ;;  %v1416_v11 = vadd.f32 %v1415_v18, %v1409_v35 }
 0x5ed   :  { %v1296_v55 = vadd.f32 %v2420_v43, %v2094_v58  ;;  %v1410_v12 = vmax.f32 %v1396_v46, 0.0  ;;  %v1438_v10 = vadd.f32 %v1437_v49, %v1431_v5 }
 0x5ef   :  { %v1401_v33 = vadd.f32 %v4201_v47, %v1296_v55  ;;  %v1417_v13 = vadd.f32 %v1416_v11, %v1410_v12  ;;  %v1432_v34 = vmul.f32 %v1410_v12, %v1410_v12 }
 0x5f1   :  { %v1411_v14 = vmax.f32 %v1401_v33, 0.0  ;;  %v1439_v15 = vadd.f32 %v1438_v10, %v1432_v34  ;;  %v1500_v34 = vld [vmem:[%s4520_s3] sm:$0xf] }
 0x5f3   :  { %v1433_v23 = vmul.f32 %v1411_v14, %v1411_v14  ;;  %v1418_v16 = vadd.f32 %v1417_v13, %v1411_v14 }
 0x5f5   :  { %v1419_v22 = vrot.slane %v1418_v16, 4  ;;  %v1440_v4 = vadd.f32 %v1439_v15, %v1433_v23  ;;  %v2101_v15 = vld [vmem:[%s4519_s8 + $0x80] sm:$0xff]  ;;  %v2102_v23 = vld [vmem:[%s4519_s8 + $0x88] sm:$0xff] }
 0x5f7   :  { %v1420_v6 = vadd.f32 %v1419_v22, %v1418_v16  ;;  %v1441_v26 = vrot.slane %v1440_v4, 4  ;;  %v2103_v16 = vld [vmem:[%s4519_s8 + $0x90] sm:$0xff]  ;;  %v3174_v22 = vpack.c.bf16 %v2102_v23, %v2101_v15 }
 0x5f8   :  { %v1868_v23 = vld [vmem:[%s4523_s10 + $0x30] sm:$0xff] }
 0x5f9   :  { %v1421_v27 = vrot.slane %v1420_v6, 2  ;;  %v1442_v32 = vadd.f32 %v1441_v26, %v1440_v4  ;;  %v2104_v4 = vld [vmem:[%s4519_s8 + $0x98] sm:$0xff]  ;;  %v2105_v26 = vld [vmem:[%s4519_s8 + $0xa0] sm:$0xff] }
 0x5fb   :  { %v1422_v25 = vadd.f32 %v1421_v27, %v1420_v6  ;;  %v1443_v48 = vrot.slane %v1442_v32, 2  ;;  %v3177_v6 = vpack.c.bf16 %v2104_v4, %v2103_v16  ;;  %v2106_v27 = vld [vmem:[%s4519_s8 + $0xa8] sm:$0xff]  ;;  %v1869_v16 = vld [vmem:[%s4523_s10 + $0x38] sm:$0xff]  ;;  %v1870_v4 = vld [vmem:[%s4523_s10 + $0x40] sm:$0xff] }
 0x5fd   :  { %v1423_v28 = vrot.slane %v1422_v25, 1  ;;  %v1444_v58 = vadd.f32 %v1443_v48, %v1442_v32  ;;  %v3180_v32 = vpack.c.bf16 %v2106_v27, %v2105_v26  ;;  %v2108_v48 = vld [vmem:[%s4519_s8 + $0xb8] sm:$0xff]  ;;  %v1872_v27 = vld [vmem:[%s4523_s10 + $0x50] sm:$0xff] }
 0x5ff   :  { %v1424_v29 = vadd.f32 %v1423_v28, %v1422_v25  ;;  %v1445_v38 = vrot.slane %v1444_v58, 1  ;;  %v2107_v25 = vld [vmem:[%s4519_s8 + $0xb0] sm:$0xff] }
 0x600   :  { %v3183_v28 = vpack.c.bf16 %v2108_v48, %v2107_v25  ;;  %v1874_v48 = vld [vmem:[%s4523_s10 + $0x60] sm:$0xff] }
 0x601   :  { %v1425_v52 = vmul.f32 0.015625, %v1424_v29  ;;  %v1446_v47 = vadd.f32 %v1445_v38, %v1444_v58  ;;  %v2109_v58 = vld [vmem:[%s4519_s8 + $0xc0] sm:$0xff]  ;;  %v2110_v29 = vld [vmem:[%s4519_s8 + $0xc8] sm:$0xff] }
 0x602   :  { %v3186_v38 = vpack.c.bf16 %v2110_v29, %v2109_v58  ;;  %v2118_v29 = vld [vmem:[%s4522_s9 + $0x1] ss:$0 sm:$0xff] }
 0x603   :  { %v1447_v56 = vmul.f32 0.015625, %v1446_v47  ;;  %v1448_v7 = vmul.f32 %v1425_v52, %v1425_v52  ;;  %v1456_v17 = vsub.f32 %v1410_v12, %v1425_v52  ;;  %v1450_v41 = vsub.f32 %v4271_v20, %v1425_v52  ;;  %v2112_v47 = vld [vmem:[%s4519_s8 + $0xd8] sm:$0xff] }
 0x604   :  { %v1451_v8 = vsub.f32 %v4274_v24, %v1425_v52  ;;  %v1452_v30 = vsub.f32 %v4283_v2, %v1425_v52  ;;  %v1453_v21 = vsub.f32 %v4289_v37, %v1425_v52  ;;  %v1454_v0 = vsub.f32 %v4295_v59, %v1425_v52  ;;  %v2098_v2 = vld [vmem:[%s4518_s7 + $0x2] ss:$0 sm:$0xff] }
 0x605   :  { %v1449_v1 = vsub.f32 %v1447_v56, %v1448_v7  ;;  %v1455_v39 = vsub.f32 %v1409_v35, %v1425_v52  ;;  %v1457_v40 = vsub.f32 %v1411_v14, %v1425_v52  ;;  %v1501_v14 = vunpack.c.l.bf16 %v1500_v34  ;;  %v2111_v52 = vld [vmem:[%s4519_s8 + $0xd0] sm:$0xff]  ;;  %v2113_v7 = vld [vmem:[%s4519_s8 + $0xe0] sm:$0xff] }
 0x606   :  { %v3189_v56 = vpack.c.bf16 %v2112_v47, %v2111_v52  ;;  %v1866_v34 = vld [vmem:[%s4523_s10 + $0x20] sm:$0xff] }
 0x607   :  { %v1458_v44 = vadd.f32 1e-05, %v1449_v1 }
 0x609   :  { %3252 = vrsqrt.f32 %v1458_v44  ;;  %v2121_v44 = vld [vmem:[%s4519_s8 + $0x110] sm:$0xff] }
 0x613   :  { %v3253_v51 = vpop.eup %3252 }
 0x614   :  { %v1466_v54 = vmul.f32 %v3253_v51, %v1456_v17  ;;  %v1460_v20 = vmul.f32 %v3253_v51, %v1450_v41  ;;  %v1461_v42 = vmul.f32 %v3253_v51, %v1451_v8  ;;  %v1462_v24 = vmul.f32 %v3253_v51, %v1452_v30  ;;  %v2114_v17 = vld [vmem:[%s4519_s8 + $0xe8] sm:$0xff] }
 0x615   :  { %v1463_v37 = vmul.f32 %v3253_v51, %v1453_v21  ;;  %v1464_v57 = vmul.f32 %v3253_v51, %v1454_v0  ;;  %v1465_v59 = vmul.f32 %v3253_v51, %v1455_v39  ;;  %v1467_v61 = vmul.f32 %v3253_v51, %v1457_v40  ;;  %v2115_v21 = vld [vmem:[%s4519_s8 + $0xf0] sm:$0xff]  ;;  %v2116_v0 = vld [vmem:[%s4519_s8 + $0xf8] sm:$0xff]  ;;  %v2119_v39 = vld [vmem:[%s4519_s8 + $0x100] sm:$0xff] }
 0x616   :  { %v1482_v3 = vmul.f32 %v2096_v53, %v1466_v54  ;;  %v1476_v50 = vmul.f32 %v2096_v53, %v1460_v20  ;;  %v1477_v60 = vmul.f32 %v2096_v53, %v1461_v42  ;;  %v1478_v18 = vmul.f32 %v2096_v53, %v1462_v24  ;;  %v2120_v40 = vld [vmem:[%s4519_s8 + $0x108] sm:$0xff]  ;;  %v2123_v20 = vld [vmem:[%s4519_s8 + $0x120] sm:$0xff] }
 0x617   :  { %v1479_v19 = vmul.f32 %v2096_v53, %v1463_v37  ;;  %v1480_v62 = vmul.f32 %v2096_v53, %v1464_v57  ;;  %v1481_v35 = vmul.f32 %v2096_v53, %v1465_v59  ;;  %v1483_v49 = vmul.f32 %v2096_v53, %v1467_v61  ;;  %v2122_v53 = vld [vmem:[%s4519_s8 + $0x118] sm:$0xff]  ;;  %v2124_v42 = vld [vmem:[%s4519_s8 + $0x128] sm:$0xff]  ;;  %v2127_v59 = vld [vmem:[%s4519_s8 + $0x140] sm:$0xff] }
 0x618   :  { %v1492_v63 = vadd.f32 %v2098_v2, %v1476_v50  ;;  %v1493_v45 = vadd.f32 %v2098_v2, %v1477_v60  ;;  %v1494_v31 = vadd.f32 %v2098_v2, %v1478_v18  ;;  %v1498_v5 = vadd.f32 %v2098_v2, %v1482_v3  ;;  %v2126_v37 = vld [vmem:[%s4519_s8 + $0x138] sm:$0xff]  ;;  %v2128_v61 = vld [vmem:[%s4519_s8 + $0x148] sm:$0xff]  ;;  %v2129_v50 = vld [vmem:[%s4519_s8 + $0x150] sm:$0xff] }
 0x619   :  { %v1495_v43 = vadd.f32 %v2098_v2, %v1479_v19  ;;  %v1496_v46 = vadd.f32 %v2098_v2, %v1480_v62  ;;  %v1497_v11 = vadd.f32 %v2098_v2, %v1481_v35  ;;  %v1499_v55 = vadd.f32 %v2098_v2, %v1483_v49  ;;  %v2125_v2 = vld [vmem:[%s4519_s8 + $0x130] sm:$0xff]  ;;  %v2130_v60 = vld [vmem:[%s4519_s8 + $0x158] sm:$0xff]  ;;  %v2131_v19 = vld [vmem:[%s4519_s8 + $0x160] sm:$0xff] }
 0x61a   :  { %v3138_v12 = vpack.c.bf16 %v1493_v45, %v1492_v63  ;;  %v3192_v41 = vpack.c.bf16 %v2114_v17, %v2113_v7  ;;  %v3195_v1 = vpack.c.bf16 %v2116_v0, %v2115_v21  ;;  %v3198_v51 = vpack.c.bf16 %v2120_v40, %v2119_v39  ;;  %v2132_v62 = vld [vmem:[%s4519_s8 + $0x168] sm:$0xff]  ;;  %v2100_v49 = vld [vmem:[%s4522_s9] ss:$0 sm:$0xff]  ;;  %v1876_v7 = vld [vmem:[%s4523_s10 + $0x70] sm:$0xff] }
 0x61b   :  { %v3141_v10 = vpack.c.bf16 %v1495_v43, %v1494_v31  ;;  %v3144_v33 = vpack.c.bf16 %v1497_v11, %v1496_v46  ;;  %v3147_v13 = vpack.c.bf16 %v1499_v55, %v1498_v5  ;;  %v3201_v54 = vpack.c.bf16 %v2122_v53, %v2121_v44  ;;  %v2133_v43 = vld [vmem:[%s4519_s8 + $0x170] sm:$0xff]  ;;  %v2134_v46 = vld [vmem:[%s4519_s8 + $0x178] sm:$0xff]  ;;  %v1862_v55 = vld [vmem:[%s4523_s10] sm:$0xff] }
 0x61c   :  { %3139 = vmatpush3.bf16.msra.mxu1 %v3138_v12  ;;  %v3204_v24 = vpack.c.bf16 %v2124_v42, %v2123_v20  ;;  %v3207_v57 = vpack.c.bf16 %v2126_v37, %v2125_v2  ;;  %v3210_v3 = vpack.c.bf16 %v2128_v61, %v2127_v59  ;;  %v3213_v18 = vpack.c.bf16 %v2130_v60, %v2129_v50  ;;  %v1863_v12 = vld [vmem:[%s4523_s10 + $0x8] sm:$0xff]  ;;  %v1877_v17 = vld [vmem:[%s4523_s10 + $0x78] sm:$0xff] }
 0x61d   :  { %3140 = vmatprep.subr.bf16.mxu1 %v3262_v9  ;;  %v3216_v35 = vpack.c.bf16 %v2132_v62, %v2131_v19  ;;  %v3219_v11 = vpack.c.bf16 %v2134_v46, %v2133_v43 }
 0x620   :  { %3142 = vmatpush3.bf16.msra.mxu1 %v3141_v10  ;;  %v3222_v10 = vpack.c.bf16 %v1863_v12, %v1862_v55 }
 0x621   :  { %3143 = vmatprep.subr.bf16.mxu1 %v3262_v9 }
 0x624   :  { %3145 = vmatpush3.bf16.msra.mxu1 %v3144_v33  ;;  %v1865_v33 = vld [vmem:[%s4523_s10 + $0x18] sm:$0xff] }
 0x625   :  { %3146 = vmatprep.subr.bf16.mxu1 %v3262_v9 }
 0x628   :  { %3148 = vmatpush3.bf16.msra.mxu1 %v3147_v13 }
 0x629   :  { %3173 = vmatprep.subr.bf16.mxu1 %v3262_v9 }
 0x62b   :  { %2755 = vmatmul.mubr.msk.f32.vlgmr.msra.gmra.mrb[48].mxu1 %vm75_vm0, %v1501_v14  ;;  %v1867_v14 = vld [vmem:[%s4523_s10 + $0x28] sm:$0xff] }
 0x62c   :  { %2824 = vmatprep.mubr.msk.f32.mxu1 %vm3263_vm1, %v3264_v36  ;;  %3175 = vmatpush3.bf16.msra.mxu1 %v3174_v22  ;;  %v3228_v15 = vpack.c.bf16 %v1867_v14, %v1866_v34  ;;  %v3231_v22 = vpack.c.bf16 %v1869_v16, %v1868_v23 }
 0x62d   :  { %3176 = vmatprep.subr.bf16.mxu1 %v3262_v9 }
 0x630   :  { %3178 = vmatpush3.bf16.msra.mxu1 %v3177_v6  ;;  %v1871_v6 = vld [vmem:[%s4523_s10 + $0x48] sm:$0xff] }
 0x631   :  { %3179 = vmatprep.subr.bf16.mxu1 %v3262_v9  ;;  %v3234_v26 = vpack.c.bf16 %v1871_v6, %v1870_v4 }
 0x634   :  { %3181 = vmatpush3.bf16.msra.mxu1 %v3180_v32  ;;  %v1873_v32 = vld [vmem:[%s4523_s10 + $0x58] sm:$0xff] }
 0x635   :  { %3182 = vmatprep.subr.bf16.mxu1 %v3262_v9  ;;  %v3237_v25 = vpack.c.bf16 %v1873_v32, %v1872_v27 }
 0x638   :  { %3184 = vmatpush3.bf16.msra.mxu1 %v3183_v28  ;;  %v1875_v28 = vld [vmem:[%s4523_s10 + $0x68] sm:$0xff] }
 0x639   :  { %3185 = vmatprep.subr.bf16.mxu1 %v3262_v9  ;;  %v3240_v58 = vpack.c.bf16 %v1875_v28, %v1874_v48 }
 0x63c   :  { %3187 = vmatpush3.bf16.msra.mxu1 %v3186_v38 }
 0x63d   :  { %3188 = vmatprep.subr.bf16.mxu1 %v3262_v9 }
 0x640   :  { %3190 = vmatpush3.bf16.msra.mxu1 %v3189_v56 }
 0x641   :  { %3191 = vmatprep.subr.bf16.mxu1 %v3262_v9 }
 0x644   :  { %3193 = vmatpush3.bf16.msra.mxu1 %v3192_v41  ;;  %v3243_v41 = vpack.c.bf16 %v1877_v17, %v1876_v7 }
 0x645   :  { %3194 = vmatprep.subr.bf16.mxu1 %v3262_v9 }
 0x648   :  { %3196 = vmatpush3.bf16.msra.mxu1 %v3195_v1  ;;  %v2137_v1 = vld [vmem:[%s4524_s11] ss:$0 sm:$0xff] }
 0x649   :  { %3221 = vmatprep.subr.bf16.mxu1 %v3262_v9 }
 0x6fe   :  { %v1571_v8 = vpop.f32.mrb[48].mxu1 }
 0x6ff   :  { %1575 = vst [vmem:[%s4521_s13] sm:$0xff] %v1571_v8  ;;  %v2756_v30 = vpop.f32.mrb[49].mxu1  ;;  %2790 = vmatmul.mubr.f32.vlgmr.msra.gmra.mrb[48].mxu0 %v1571_v8 }
 0x700   :  { %2859 = vmatprep.mubr.msk.f32.mxu0 %vm3263_vm1, %v3264_v36  ;;  %3199 = vmatpush3.bf16.msra.mxu0 %v3198_v51 }
 0x701   :  { %3200 = vmatprep.subr.bf16.mxu0 %v3262_v9 }
 0x704   :  { %3202 = vmatpush3.bf16.msra.mxu0 %v3201_v54 }
 0x705   :  { %3203 = vmatprep.subr.bf16.mxu0 %v3262_v9 }
 0x708   :  { %3205 = vmatpush3.bf16.msra.mxu0 %v3204_v24 }
 0x709   :  { %3206 = vmatprep.subr.bf16.mxu0 %v3262_v9 }
 0x70c   :  { %3208 = vmatpush3.bf16.msra.mxu0 %v3207_v57 }
 0x70d   :  { %3209 = vmatprep.subr.bf16.mxu0 %v3262_v9 }
 0x710   :  { %3211 = vmatpush3.bf16.msra.mxu0 %v3210_v3 }
 0x711   :  { %3212 = vmatprep.subr.bf16.mxu0 %v3262_v9 }
 0x714   :  { %3214 = vmatpush3.bf16.msra.mxu0 %v3213_v18 }
 0x715   :  { %3215 = vmatprep.subr.bf16.mxu0 %v3262_v9 }
 0x718   :  { %3217 = vmatpush3.bf16.msra.mxu0 %v3216_v35 }
 0x719   :  { %3218 = vmatprep.subr.bf16.mxu0 %v3262_v9 }
 0x71c   :  { %3220 = vmatpush3.bf16.msra.mxu0 %v3219_v11 }
 0x7d2   :  { %v1665_v63 = vpop.f32.mrb[48].mxu0 }
 0x7d3   :  { %v1666_v45 = vadd.f32 %v2100_v49, %v1665_v63  ;;  %v2791_v31 = vpop.f32.mrb[49].mxu0 }
 0x7d5   :  { %v1669_v5 = vmax.f32 %v1666_v45, 0.0 }
 0x7d7   :  { %2825 = vmatmul.mubr.f32.vlgmr.msra.gmra.mrb[50].mxu1 %v1669_v5 }
 0x7d8   :  { %2894 = vmatprep.mubr.msk.f32.mxu1 %vm3263_vm1, %v3264_v36  ;;  %v1864_v36 = vld [vmem:[%s4523_s10 + $0x10] sm:$0xff]  ;;  %3223 = vmatpush3.bf16.msra.mxu1 %v3222_v10 }
 0x7d9   :  { %v3225_v13 = vpack.c.bf16 %v1865_v33, %v1864_v36  ;;  %3224 = vmatprep.subr.bf16.mxu1 %v3262_v9 }
 0x7dc   :  { %3226 = vmatpush3.bf16.msra.mxu1 %v3225_v13 }
 0x7dd   :  { %3227 = vmatprep.subr.bf16.mxu1 %v3262_v9 }
 0x7e0   :  { %3229 = vmatpush3.bf16.msra.mxu1 %v3228_v15 }
 0x7e1   :  { %3230 = vmatprep.subr.bf16.mxu1 %v3262_v9 }
 0x7e4   :  { %3232 = vmatpush3.bf16.msra.mxu1 %v3231_v22 }
 0x7e5   :  { %3233 = vmatprep.subr.bf16.mxu1 %v3262_v9 }
 0x7e8   :  { %3235 = vmatpush3.bf16.msra.mxu1 %v3234_v26 }
 0x7e9   :  { %3236 = vmatprep.subr.bf16.mxu1 %v3262_v9 }
 0x7ec   :  { %3238 = vmatpush3.bf16.msra.mxu1 %v3237_v25 }
 0x7ed   :  { %3239 = vmatprep.subr.bf16.mxu1 %v3262_v9 }
 0x7f0   :  { %3241 = vmatpush3.bf16.msra.mxu1 %v3240_v58 }
 0x7f1   :  { %3242 = vmatprep.subr.bf16.mxu1 %v3262_v9  ;;  %v2136_v9 = vld [vmem:[%s4522_s9 + $0x2] ss:$0 sm:$0xff] }
 0x7f4   :  { %3244 = vmatpush3.bf16.msra.mxu1 %v3243_v41 }
 0x8aa   :  { %v1761_v38 = vpop.f32.mrb[50].mxu1 }
 0x8ab   :  { %v1762_v52 = vadd.f32 %v2118_v29, %v1761_v38  ;;  %v2826_v47 = vpop.f32.mrb[51].mxu1 }
 0x8ad   :  { %v1765_v56 = vmax.f32 %v1762_v52, 0.0 }
 0x8af   :  { %2860 = vmatmul.mubr.f32.vlgmr.msra.gmra.mrb[50].mxu0 %v1765_v56 }
 0x982   :  { %v1857_v8 = vpop.f32.mrb[50].mxu0 }
 0x983   :  { %v1858_v30 = vadd.f32 %v2136_v9, %v1857_v8  ;;  %v2861_v21 = vpop.f32.mrb[51].mxu0 }
 0x985   :  { %v1861_v0 = vmax.f32 %v1858_v30, 0.0 }
 0x987   :  { %2895 = vmatmul.mubr.f32.vlgmr.msra.gmra.mrb[52].mxu1 %v1861_v0 }
 0xa5a   :  { %v1951_v39 = vpop.f32.mrb[52].mxu1 }
 0xa5b   :  { %v1952_v40 = vadd.f32 %v2137_v1, %v1951_v39  ;;  %v2896_v44 = vpop.f32.mrb[53].mxu1 }
 0xa5d   :  { %1955 = vst [vmem:[%s4525_s12] sm:$0xff] %v1952_v40 }

</bundles_post_ra>
